<compile_context>
chip_gen: v7x
topology: tpu7x:2x2x1
jax: 0.10.0
libtpu: 0.0.40
codegen_flags: <defaults>
</compile_context>

<pallas_src>
import functools

import jax
import jax.numpy as jnp
from jax import lax
from jax.experimental import pallas as pl
from jax.experimental.pallas import tpu as pltpu


def _device_kind():
    try:
        return jax.devices()[0].device_kind.lower()
    except Exception:  # no TPU visible at trace time
        return ""


def _default_n_parallel():
    # Only v7x has two TensorCores worth sharding the grid across; on
    # v5e/v6e the leading "parallel" axis would just be a serial loop.
    return 2 if "v7" in _device_kind() else 1


def _block_byte_cap():
    # Per-input block budget.  Double-buffered 2 inputs => 4x this in VMEM,
    # comfortably under the scoped-VMEM defaults (v5e 16 MiB, v6e/v7x 32 MiB).
    return (1 << 20) if "v5" in _device_kind() else (2 << 20)


def _rmse_partial_kernel(x_ref, y_ref, o_ref, *, k_blocks, lane_block, n_cols,
                         sublanes):
    """Accumulate per-lane partial sums of (x - y)^2 into o_ref (sublanes, 128)."""
    p = pl.program_id(0)   # parallel axis (dual-TC on v7x; size 1 elsewhere)
    k = pl.program_id(1)   # reduction axis

    @pl.when(k == 0)
    def _init():
        o_ref[...] = jnp.zeros_like(o_ref)

    # Logical (unclamped) starting column of this block in the (sublanes,
    # n_cols) view.
    col0 = (p * k_blocks + k) * lane_block

    def accumulate(d):
        # d: (sublanes, lane_block) f32.  Lane-aligned halving tree down to a
        # (sublanes, 128) partial: every slice is a 128-aligned vreg view and
        # every add is a plain VALU op (no XLU, no big resident accumulator).
        v = d * d
        w = lane_block
        while w > 128 and (w // 128) % 2 == 0:
            h = w // 2
            v = v[:, :h] + v[:, h:w]
            w = h
        acc = v[:, 0:128]
        for c in range(1, w // 128):   # leftover odd chunk count (if any)
            acc = acc + v[:, c * 128:(c + 1) * 128]
        o_ref[...] += acc

    @pl.when(col0 + lane_block <= n_cols)
    def _full_block():
        # Hot path: no iota / compare / select.
        accumulate(x_ref[...].astype(jnp.float32) - y_ref[...].astype(jnp.float32))

    @pl.when(col0 + lane_block > n_cols)
    def _edge_block():
        # Cold path: partial edge block (undefined padding in VMEM) or a fully
        # out-of-range clamped block from the parallel split.  Mask the
        # *difference* so garbage (even NaN/Inf) never reaches the sum.
        lane_idx = lax.broadcasted_iota(jnp.int32, (sublanes, lane_block), 1)
        valid = lane_idx < (n_cols - col0)
        d = jnp.where(
            valid,
            x_ref[...].astype(jnp.float32) - y_ref[...].astype(jnp.float32),
            0.0)
        accumulate(d)


def rmse1d(x, y, *, lane_block=None, n_parallel=None, min_kernel_size=65536):
    """Pallas equivalent of RMSE1d.forward: sqrt(mean((x - y)^2)) for 1-D x, y."""
    assert x.ndim == 1 and y.ndim == 1, "x and y must be vectors"
    assert x.shape == y.shape
    n = x.shape[0]

    # Tiny inputs: pallas_call launch + per-step overhead dominates; let XLA
    # fuse the naive expression instead.  (n == 0 -> NaN, same as torch.)
    if n < max(min_kernel_size, 8):
        return jnp.sqrt(jnp.mean((x.astype(jnp.float32) - y.astype(jnp.float32)) ** 2))

    if n_parallel is None:
        n_parallel = _default_n_parallel()

    # Sublane count matched to dtype packing (bf16 vregs are 16x128, int8 32x128)
    # so narrow-dtype loads arrive fully packed.
    min_itemsize = max(1, min(x.dtype.itemsize, y.dtype.itemsize))
    max_itemsize = max(1, max(x.dtype.itemsize, y.dtype.itemsize))
    sublanes = max(8, 32 // min_itemsize)
    if n % sublanes != 0 and n % 8 == 0:
        sublanes = 8   # keep the reshape copy-free; give up some packing

    # Bulk = everything divisible by `sublanes`: reshapes to (sublanes, n_cols)
    # for free (row-major contiguous, no copy).  The small remainder is folded
    # in below with plain jnp.
    n_main = (n // sublanes) * sublanes
    n_cols = n_main // sublanes

    if lane_block is None:
        cap = max(128, _block_byte_cap() // (sublanes * max_itemsize))
        cap = 1 << (cap.bit_length() - 1)            # round down to a power of 2
        # Prefer cap-sized blocks once there are >= 4 reduction steps per
        # parallel slice (amortizes the ~0.35 us/step overhead); otherwise size
        # for ~4 steps so the DMA pipeline still has work to overlap.
        if pl.cdiv(n_cols, n_parallel * cap) >= 4:
            lane_block = cap
        else:
            want = int(pl.cdiv(n_cols, n_parallel * 4))
            lane_block = int(min(max(128, pl.next_power_of_2(want)), cap))
    assert lane_block % 128 == 0 and lane_block > 0

    n_col_blocks = int(pl.cdiv(n_cols, lane_block))
    k_blocks = int(pl.cdiv(n_col_blocks, n_parallel))
    max_blk = n_col_blocks - 1

    if n_main == n:
        xb, yb = x, y                      # no slice, no copy
    else:
        # TODO(synk): a fully copy-free path for n % sublanes != 0 would need a
        # manual-DMA (memory_space=pl.ANY) path on the unsliced 1-D arrays;
        # only this rare misaligned case pays the slice copy.
        xb, yb = x[:n_main], y[:n_main]
    x2 = xb.reshape(sublanes, n_cols)      # free row-major reshape
    y2 = yb.reshape(sublanes, n_cols)

    def in_map(p, k):
        # Clamp so fully out-of-range blocks (possible when n_col_blocks is not
        # a multiple of n_parallel) re-read a valid block; their contribution
        # is zeroed by the in-kernel edge-path mask.
        return (0, jnp.minimum(p * k_blocks + k, max_blk))

    kernel = functools.partial(
        _rmse_partial_kernel,
        k_blocks=k_blocks, lane_block=lane_block, n_cols=n_cols,
        sublanes=sublanes)

    partials = pl.pallas_call(
        kernel,
        out_shape=jax.ShapeDtypeStruct((n_parallel * sublanes, 128), jnp.float32),
        grid_spec=pltpu.PrefetchScalarGridSpec(
            num_scalar_prefetch=0,
            grid=(n_parallel, k_blocks),
            in_specs=[
                pl.BlockSpec((sublanes, lane_block), in_map),
                pl.BlockSpec((sublanes, lane_block), in_map),
            ],
            out_specs=pl.BlockSpec((sublanes, 128), lambda p, k: (p, 0)),
        ),
        compiler_params=pltpu.CompilerParams(
            dimension_semantics=("parallel", "arbitrary")),
    )(x2, y2)

    total = jnp.sum(partials, dtype=jnp.float32)
    if n_main != n:  # fold in the < sublanes element remainder
        dt = x[n_main:].astype(jnp.float32) - y[n_main:].astype(jnp.float32)
        total = total + jnp.sum(dt * dt)
    return jnp.sqrt(total / jnp.float32(n))


if __name__ == "__main__":
    def ref_rmse(x, y):
        return jnp.sqrt(jnp.mean((x.astype(jnp.float32) - y.astype(jnp.float32)) ** 2))

    cases = [
        # (n, dtype, kwargs, rtol)
        (256, jnp.float32, {}, 1e-5),                                   # jnp fallback path
        (200_003, jnp.float32, {}, 1e-5),                               # slice + <8-elem tail + partial edge block
        (70_000, jnp.float32, dict(lane_block=1024, n_parallel=2), 1e-5),  # odd block count -> clamped OOB block
        (1 << 20, jnp.float32, {}, 1e-5),                               # aligned multi-step pipelined reduction
        (1 << 19, jnp.bfloat16, {}, 1e-4),                              # packed 16-sublane bf16 path
    ]
    key = jax.random.PRNGKey(0)
    ok = True
    for i, (n, dt, kw, rtol) in enumerate(cases):
        key, kx, ky = jax.random.split(key, 3)
        x = jax.random.normal(kx, (n,), dtype=jnp.float32).astype(dt)
        y = jax.random.normal(ky, (n,), dtype=jnp.float32).astype(dt)
        got = rmse1d(x, y, **kw)
        jax.block_until_ready(got)
        want = ref_rmse(x, y)
        if not bool(jnp.allclose(got, want, rtol=rtol, atol=1e-6)):
            ok = False
            print(f"MISMATCH case {i} (n={n}, dtype={dt.__name__}): got={got} want={want}")
    if ok:
        print("KERNEL_OK")
</pallas_src>

<mosaic_0001>
module attributes {stable_mosaic.version = 11 : i64} {
  func.func @_rmse_partial_kernel(%arg0: i32, %arg1: i32, %arg2: memref<8x8192xf32, #tpu.memory_space<vmem>>, %arg3: memref<8x8192xf32, #tpu.memory_space<vmem>>, %arg4: memref<8x128xf32, #tpu.memory_space<vmem>>) attributes {dimension_semantics = [#tpu.dimension_semantics<parallel>, #tpu.dimension_semantics<arbitrary>], iteration_bounds = array<i64: 1, 4>, scalar_prefetch = 0 : i64, scratch_operands = 0 : i64, tpu.core_type = #tpu.core_type<tc>, window_params = [{transform_indices = @transform_0, window_bounds = array<i64: 8, 8192>}, {transform_indices = @transform_1, window_bounds = array<i64: 8, 8192>}, {transform_indices = @transform_2, window_bounds = array<i64: 8, 128>}]} {
    %c0_i32 = arith.constant 0 : i32
    %0 = arith.cmpi eq, %arg1, %c0_i32 : i32
    %1 = arith.extui %0 : i1 to i32
    %c0_i32_0 = arith.constant 0 : i32
    %2 = arith.cmpi ne, %1, %c0_i32_0 : i32
    scf.if %2 {
      %cst = arith.constant 0.000000e+00 : f32
      %14 = vector.broadcast %cst : f32 to vector<8x128xf32>
      %c0 = arith.constant 0 : index
      %c0_6 = arith.constant 0 : index
      %15 = vector.load %arg4[%c0, %c0_6] : memref<8x128xf32, #tpu.memory_space<vmem>>, vector<8x128xf32>
      tpu.vector_store %arg4[%c0, %c0_6], %14 {strides = array<i32>} : memref<8x128xf32, #tpu.memory_space<vmem>>, vector<8x128xf32>,
    } else {
    }
    %c4_i32 = arith.constant 4 : i32
    %3 = arith.muli %arg0, %c4_i32 : i32
    %4 = arith.addi %3, %arg1 : i32
    %c8192_i32 = arith.constant 8192 : i32
    %5 = arith.muli %4, %c8192_i32 : i32
    %c8192_i32_1 = arith.constant 8192 : i32
    %6 = arith.addi %5, %c8192_i32_1 : i32
    %c25000_i32 = arith.constant 25000 : i32
    %7 = arith.cmpi sle, %6, %c25000_i32 : i32
    %8 = arith.extui %7 : i1 to i32
    %c0_i32_2 = arith.constant 0 : i32
    %9 = arith.cmpi ne, %8, %c0_i32_2 : i32
    scf.if %9 {
      %c0 = arith.constant 0 : index
      %c0_6 = arith.constant 0 : index
      %14 = vector.load %arg2[%c0, %c0_6] : memref<8x8192xf32, #tpu.memory_space<vmem>>, vector<8x8192xf32>
      %c0_7 = arith.constant 0 : index
      %c0_8 = arith.constant 0 : index
      %15 = vector.load %arg3[%c0_7, %c0_8] : memref<8x8192xf32, #tpu.memory_space<vmem>>, vector<8x8192xf32>
      %16 = arith.subf %14, %15 : vector<8x8192xf32>
      %17 = arith.mulf %16, %16 : vector<8x8192xf32>
      %18 = vector.extract_strided_slice %17 {offsets = [0, 0], sizes = [8, 4096], strides = [1, 1]} : vector<8x8192xf32> to vector<8x4096xf32>
      %19 = vector.extract_strided_slice %17 {offsets = [0, 4096], sizes = [8, 4096], strides = [1, 1]} : vector<8x8192xf32> to vector<8x4096xf32>
      %20 = arith.addf %18, %19 : vector<8x4096xf32>
      %21 = vector.extract_strided_slice %20 {offsets = [0, 0], sizes = [8, 2048], strides = [1, 1]} : vector<8x4096xf32> to vector<8x2048xf32>
      %22 = vector.extract_strided_slice %20 {offsets = [0, 2048], sizes = [8, 2048], strides = [1, 1]} : vector<8x4096xf32> to vector<8x2048xf32>
      %23 = arith.addf %21, %22 : vector<8x2048xf32>
      %24 = vector.extract_strided_slice %23 {offsets = [0, 0], sizes = [8, 1024], strides = [1, 1]} : vector<8x2048xf32> to vector<8x1024xf32>
      %25 = vector.extract_strided_slice %23 {offsets = [0, 1024], sizes = [8, 1024], strides = [1, 1]} : vector<8x2048xf32> to vector<8x1024xf32>
      %26 = arith.addf %24, %25 : vector<8x1024xf32>
      %27 = vector.extract_strided_slice %26 {offsets = [0, 0], sizes = [8, 512], strides = [1, 1]} : vector<8x1024xf32> to vector<8x512xf32>
      %28 = vector.extract_strided_slice %26 {offsets = [0, 512], sizes = [8, 512], strides = [1, 1]} : vector<8x1024xf32> to vector<8x512xf32>
      %29 = arith.addf %27, %28 : vector<8x512xf32>
      %30 = vector.extract_strided_slice %29 {offsets = [0, 0], sizes = [8, 256], strides = [1, 1]} : vector<8x512xf32> to vector<8x256xf32>
      %31 = vector.extract_strided_slice %29 {offsets = [0, 256], sizes = [8, 256], strides = [1, 1]} : vector<8x512xf32> to vector<8x256xf32>
      %32 = arith.addf %30, %31 : vector<8x256xf32>
      %33 = vector.extract_strided_slice %32 {offsets = [0, 0], sizes = [8, 128], strides = [1, 1]} : vector<8x256xf32> to vector<8x128xf32>
      %34 = vector.extract_strided_slice %32 {offsets = [0, 128], sizes = [8, 128], strides = [1, 1]} : vector<8x256xf32> to vector<8x128xf32>
      %35 = arith.addf %33, %34 : vector<8x128xf32>
      %c0_9 = arith.constant 0 : index
      %c0_10 = arith.constant 0 : index
      %36 = vector.load %arg4[%c0_9, %c0_10] : memref<8x128xf32, #tpu.memory_space<vmem>>, vector<8x128xf32>
      %37 = arith.addf %36, %35 : vector<8x128xf32>
      %c0_11 = arith.constant 0 : index
      %c0_12 = arith.constant 0 : index
      %38 = vector.load %arg4[%c0_11, %c0_12] : memref<8x128xf32, #tpu.memory_space<vmem>>, vector<8x128xf32>
      tpu.vector_store %arg4[%c0_11, %c0_12], %37 {strides = array<i32>} : memref<8x128xf32, #tpu.memory_space<vmem>>, vector<8x128xf32>,
    } else {
    }
    %c8192_i32_3 = arith.constant 8192 : i32
    %10 = arith.addi %5, %c8192_i32_3 : i32
    %c25000_i32_4 = arith.constant 25000 : i32
    %11 = arith.cmpi sgt, %10, %c25000_i32_4 : i32
    %12 = arith.extui %11 : i1 to i32
    %c0_i32_5 = arith.constant 0 : i32
    %13 = arith.cmpi ne, %12, %c0_i32_5 : i32
    scf.if %13 {
      %14 = tpu.iota {dimensions = array<i32: 1>} : vector<8x8192xi32>
      %c25000_i32_6 = arith.constant 25000 : i32
      %15 = arith.subi %c25000_i32_6, %5 : i32
      %16 = vector.broadcast %15 : i32 to vector<8x8192xi32>
      %17 = arith.cmpi slt, %14, %16 : vector<8x8192xi32>
      %c0 = arith.constant 0 : index
      %c0_7 = arith.constant 0 : index
      %18 = vector.load %arg2[%c0, %c0_7] : memref<8x8192xf32, #tpu.memory_space<vmem>>, vector<8x8192xf32>
      %c0_8 = arith.constant 0 : index
      %c0_9 = arith.constant 0 : index
      %19 = vector.load %arg3[%c0_8, %c0_9] : memref<8x8192xf32, #tpu.memory_space<vmem>>, vector<8x8192xf32>
      %20 = arith.subf %18, %19 : vector<8x8192xf32>
      %cst = arith.constant 0.000000e+00 : f32
      %21 = vector.broadcast %cst : f32 to vector<8x8192xf32>
      %22 = arith.select %17, %20, %21 : vector<8x8192xi1>, vector<8x8192xf32>
      %23 = arith.mulf %22, %22 : vector<8x8192xf32>
      %24 = vector.extract_strided_slice %23 {offsets = [0, 0], sizes = [8, 4096], strides = [1, 1]} : vector<8x8192xf32> to vector<8x4096xf32>
      %25 = vector.extract_strided_slice %23 {offsets = [0, 4096], sizes = [8, 4096], strides = [1, 1]} : vector<8x8192xf32> to vector<8x4096xf32>
      %26 = arith.addf %24, %25 : vector<8x4096xf32>
      %27 = vector.extract_strided_slice %26 {offsets = [0, 0], sizes = [8, 2048], strides = [1, 1]} : vector<8x4096xf32> to vector<8x2048xf32>
      %28 = vector.extract_strided_slice %26 {offsets = [0, 2048], sizes = [8, 2048], strides = [1, 1]} : vector<8x4096xf32> to vector<8x2048xf32>
      %29 = arith.addf %27, %28 : vector<8x2048xf32>
      %30 = vector.extract_strided_slice %29 {offsets = [0, 0], sizes = [8, 1024], strides = [1, 1]} : vector<8x2048xf32> to vector<8x1024xf32>
      %31 = vector.extract_strided_slice %29 {offsets = [0, 1024], sizes = [8, 1024], strides = [1, 1]} : vector<8x2048xf32> to vector<8x1024xf32>
      %32 = arith.addf %30, %31 : vector<8x1024xf32>
      %33 = vector.extract_strided_slice %32 {offsets = [0, 0], sizes = [8, 512], strides = [1, 1]} : vector<8x1024xf32> to vector<8x512xf32>
      %34 = vector.extract_strided_slice %32 {offsets = [0, 512], sizes = [8, 512], strides = [1, 1]} : vector<8x1024xf32> to vector<8x512xf32>
      %35 = arith.addf %33, %34 : vector<8x512xf32>
      %36 = vector.extract_strided_slice %35 {offsets = [0, 0], sizes = [8, 256], strides = [1, 1]} : vector<8x512xf32> to vector<8x256xf32>
      %37 = vector.extract_strided_slice %35 {offsets = [0, 256], sizes = [8, 256], strides = [1, 1]} : vector<8x512xf32> to vector<8x256xf32>
      %38 = arith.addf %36, %37 : vector<8x256xf32>
      %39 = vector.extract_strided_slice %38 {offsets = [0, 0], sizes = [8, 128], strides = [1, 1]} : vector<8x256xf32> to vector<8x128xf32>
      %40 = vector.extract_strided_slice %38 {offsets = [0, 128], sizes = [8, 128], strides = [1, 1]} : vector<8x256xf32> to vector<8x128xf32>
      %41 = arith.addf %39, %40 : vector<8x128xf32>
      %c0_10 = arith.constant 0 : index
      %c0_11 = arith.constant 0 : index
      %42 = vector.load %arg4[%c0_10, %c0_11] : memref<8x128xf32, #tpu.memory_space<vmem>>, vector<8x128xf32>
      %43 = arith.addf %42, %41 : vector<8x128xf32>
      %c0_12 = arith.constant 0 : index
      %c0_13 = arith.constant 0 : index
      %44 = vector.load %arg4[%c0_12, %c0_13] : memref<8x128xf32, #tpu.memory_space<vmem>>, vector<8x128xf32>
      tpu.vector_store %arg4[%c0_12, %c0_13], %43 {strides = array<i32>} : memref<8x128xf32, #tpu.memory_space<vmem>>, vector<8x128xf32>,
    } else {
    }
    return
  }
  func.func @transform_0(%arg0: i32, %arg1: i32) -> (i32, i32) {
    %c4_i32 = arith.constant 4 : i32
    %0 = arith.muli %arg0, %c4_i32 : i32
    %1 = arith.addi %0, %arg1 : i32
    %c3_i32 = arith.constant 3 : i32
    %2 = arith.minsi %1, %c3_i32 : i32
    %c0_i32 = arith.constant 0 : i32
    %c0_i32_0 = arith.constant 0 : i32
    return %c0_i32, %2 : i32, i32
  }
  func.func @transform_1(%arg0: i32, %arg1: i32) -> (i32, i32) {
    %c4_i32 = arith.constant 4 : i32
    %0 = arith.muli %arg0, %c4_i32 : i32
    %1 = arith.addi %0, %arg1 : i32
    %c3_i32 = arith.constant 3 : i32
    %2 = arith.minsi %1, %c3_i32 : i32
    %c0_i32 = arith.constant 0 : i32
    %c0_i32_0 = arith.constant 0 : i32
    return %c0_i32, %2 : i32, i32
  }
  func.func @transform_2(%arg0: i32, %arg1: i32) -> (i32, i32) {
    %c0_i32 = arith.constant 0 : i32
    %c0_i32_0 = arith.constant 0 : i32
    return %arg0, %c0_i32 : i32, i32
  }
}

</mosaic_0001>

<bundles_post_ra>
// kernel: tpu_custom_call.1
= control target key start
LH: loop header
LB: loop body
LE: loop exit
PB: predicated region body
PF: predicated region fallthrough
CT: control target
= control target key end

     0   :  { %7 = vsyncpa [#allocation3], 0  ;;  %s3616_s0 = inlined_call_operand.hbm [shape: f32[8,25000], index: 0, kind: input, shape index: {}]   ;;  %s3617_s1 = inlined_call_operand.hbm [shape: f32[8,25000], index: 1, kind: input, shape index: {}]   ;;  %s3618_s2 = inlined_call_operand.hbm [shape: f32[8,128], index: 2, kind: output, shape index: {}]  }
   0x1   :  { %9 = vsyncpa [#allocation3 + $0x1], 0 }
   0x2   :  { %10 = vsyncpa [#allocation6], 0 }
   0x3   :  { %12 = vsyncpa [#allocation6 + $0x1], 0 }
   0x4   :  { %13 = vsyncpa [#allocation4], 0  ;;  %s1455_s9 = smov 0   ;;  %s1457_s10 = smov 0  }
   0x5   :  { %s1459_s11 = smov 0   ;;  %s1461_s12 = smov 0  }
   0x6   :  { %s1463_s13 = smov 0   ;;  %s1465_s14 = smov 0  }
   0x7 LB: > { %s28_s15 = sadd.s32 1, %s1430_s13  ;;  %p37_p1 = scmp.lt.s32.totalorder %s1430_s13, 3  ;;  %s1434_s14 = sphi %s1465_s14, %s19_s14   ;;  %s1430_s13 = sphi %s1463_s13, %s4372_s13   ;;  %s1426_s12 = sphi %s1461_s12, %s4371_s12   ;;  %s1422_s11 = sphi %s1459_s11, %s4370_s11   ;;  %s1418_s10 = sphi %s1457_s10, %s4369_s10   ;;  %s1414_s9 = sphi %s1455_s9, %s4368_s9  }
   0x8   : > { %p29_p0 = scmp.ge.s32.totalorder %s28_s15, 4  ;;  %s1206_s16 = sadd.s32 4294967295, %s1434_s14  }
   0x9   : > { %p53_p2 = scmp.ne.s32.totalorder %s1422_s11, %s1418_s10  ;;  %p54_p4 = scmp.eq.s32.totalorder %s1434_s14, 0 }
   0xa   : > { %s4374_s15 = smov (%p29_p0, %s28_s15), 0  ;;  %p59_p5 = scmp.ne.s32.totalorder %s1418_s10, %s1414_s9 }
   0xb   : > { %s1491_s17 = scalar_select %p37_p1, %s1430_s13, 3 }
   0xc   : > { %p41_p3 = scmp.lt.s32.totalorder %s4374_s15, 3  ;;  %p60_p6 = scmp.eq.s32.totalorder %s1206_s16, 0 }
   0xd   : > { %p1499_p7 = por %p54_p4, %p53_p2  ;;  %s46_s22 = sadd.s32 1, %s1422_s11 }
   0xe   : > { %s42_s18 = scalar_select %p41_p3, %s4374_s15, 3 }
   0xf   : > { %s3791_s19 = scalar_select %p1499_p7, 1, 0 }
  0x10   : > { %p1503_p8 = por %p60_p6, %p59_p5  ;;  %s43_s21 = ssub.s32 %s1491_s17, %s42_s18 }
  0x11   : > { %p44_p9 = scmp.eq.s32.totalorder %s43_s21, 0  ;;  %p1208_p10 = scmp.ge.s32.totalorder %s1434_s14, 4 }
  0x12   : > { %s3792_s20 = scalar_select %p1503_p8, 1, 0 }
  0x13   : > { %s1510_s23 = scalar_select %p44_p9, %s1422_s11, %s46_s22  }
  0x14   : > { %139 = sbr.rel (%p1208_p10) target bundleno = 97 (0x61), region = 16 }
  0x1b   : > { %142 = sbr.rel (!%p1499_p7) target bundleno = 61 (0x3d), region = 20  ;;  %s143_s24 = sand.u32 (%p1499_p7), 1, %s1422_s11  }
  0x1c   : > { %s1210_s25 = sshll.u32 (%p1499_p7), %s1491_s17, 6  ;;  %s1209_s26 = sshll.u32 (%p1499_p7), %s143_s24, 9 }
  0x1d   : > { %s153_s27 = ssub.s32 (%p1499_p7), 196, %s1210_s25  ;;  %s1520_s30 = scalar_lea.sflag (%p1499_p7), [#allocation3], %s143_s24 }
  0x1e   : > { %p154_p11 = scmp.lt.s32.totalorder (%p1499_p7), %s153_s27, 64  ;;  %s147_s3 = scalar_lea.vmem (%p1499_p7), [#allocation2], %s1209_s26 }
  0x22   : > { %s4376_s27 = smov (!%p154_p11, %s153_s27), 64 }
  0x23   : > { %s1517_s28 = sshll.u32 %s4376_s27, 7 }
  0x24   : > { %s158_s29 = ssub.s32 8192, %s1517_s28 }
  0x25   : > { %159 = vsyncadd %s1520_s30, %s158_s29  ;;  %p1212_p12 = scmp.ne.s32.totalorder %s1517_s28, 0  ;;  %s1234_s4 = sshll.u32 %s1491_s17, 13 }
  0x26   : > { %s1528_s7 = scalar_lea.hbm %s3616_s0, %s1234_s4  ;;  %s165_s8 = sshll.u32 %s147_s3, 4  ;;  %s166_s8 = int_to_ptr.vmem [resolvable:$true] %s165_s8 }
  0x27   : > { %s1294_s9 = scalar_lea.hbm %s1528_s7, %s1517_s28  ;;  %s1298_s22 = scalar_lea.hbm %s3616_s0, 25088 }
  0x28   : > { %p1295_p13 = scmp.ne.s32.totalorder %s1528_s7, %s1294_s9  ;;  %p1299_p2 = scmp.lt.u32.totalorder %s1528_s7, %s3616_s0 }
  0x29   : > { %p1300_p3 = scmp.lt.u32.totalorder %s1298_s22, %s1294_s9  ;;  %p1302_p5 = scmp.lt.u32.totalorder %s1294_s9, %s1528_s7 }
  0x2a   : > { %p1296_p0 = pnand %p1295_p13, %p1212_p12 }
  0x2b   : > { %p1301_p4 = por %p1300_p3, %p1299_p2 }
  0x2c   : > { %p1297_p1 = pneg %p1296_p0 }
  0x2d   : > { %p1303_p6 = por %p1302_p5, %p1301_p4 }
  0x2f   : > { %p1304_p9 = pnand %p1303_p6, %p1297_p1 }
  0x31   : > { %1307 = shalt.err (!%p1304_p9)
}
  0x32   : > { %s1308_s26 = scalar_lea.vmem %s166_s8, %s1517_s28  ;;  %s1436_s27 = smov [#allocation2]  }
  0x33   : > { %p1309_p10 = scmp.ne.s32.totalorder %s166_s8, %s1308_s26  ;;  %s1312_s29 = sshll.u32 %s1436_s27, 4  ;;  %s1313_s29 = int_to_ptr.vmem [resolvable:$false] %s1312_s29 }
  0x34   : > { %s1314_s3 = scalar_lea.vmem %s1313_s29, 16384  ;;  %p1315_p0 = scmp.lt.s32.totalorder %s166_s8, %s1313_s29 }
  0x35   : > { %p1310_p11 = pnand %p1309_p10, %p1212_p12  ;;  %p1316_p8 = scmp.lt.s32.totalorder %s1314_s3, %s1308_s26 }
  0x37   : > { %p1311_p13 = pneg %p1310_p11  ;;  %p1317_p7 = por %p1316_p8, %p1315_p0 }
  0x39   : > { %p1318_p2 = pnand %p1317_p7, %p1311_p13 }
  0x3b   : > { %1321 = shalt.err (!%p1318_p2)
}
  0x3c   : > { %168 = dma.hbm_to_vmem [thread:$0]  (%p1212_p12), %s1528_s7, %s1517_s28, %s166_s8, %s1520_s30  }
  0x3d PF: > { %p3793_p1 = scmp.ne.s32.totalorder %s3791_s19, 0 }
  0x3e   : > { %s172_s4 = sand.u32 (%p3793_p1), 1, %s1422_s11   ;;  %s1217_s5 = sshll.u32 (%p3793_p1), %s1491_s17, 6 }
  0x3f   : > { %171 = sbr.rel (!%p3793_p1) target bundleno = 97 (0x61), region = 24  ;;  %s1216_s6 = sshll.u32 (%p3793_p1), %s172_s4, 9 }
  0x40   : > { %s182_s9 = ssub.s32 (%p3793_p1), 196, %s1217_s5  ;;  %s1558_s22 = scalar_lea.sflag (%p3793_p1), [#allocation6], %s172_s4 }
  0x41   : > { %p183_p3 = scmp.lt.s32.totalorder (%p3793_p1), %s182_s9, 64  ;;  %s176_s28 = scalar_lea.vmem (%p3793_p1), [#allocation5], %s1216_s6 }
  0x46   : > { %s4378_s9 = smov (!%p183_p3, %s182_s9), 64 }
  0x47   : > { %s1555_s18 = sshll.u32 %s4378_s9, 7 }
  0x48   : > { %s187_s21 = ssub.s32 8192, %s1555_s18 }
  0x49   : > { %188 = vsyncadd %s1558_s22, %s187_s21  ;;  %p1219_p7 = scmp.ne.s32.totalorder %s1555_s18, 0  ;;  %s1235_s19 = sshll.u32 %s1491_s17, 13 }
  0x4a   : > { %s1566_s8 = scalar_lea.hbm %s3617_s1, %s1235_s19  ;;  %s194_s24 = sshll.u32 %s176_s28, 4  ;;  %s195_s24 = int_to_ptr.vmem [resolvable:$true] %s194_s24 }
  0x4b   : > { %s1322_s25 = scalar_lea.hbm %s1566_s8, %s1555_s18  ;;  %s1326_s17 = scalar_lea.hbm %s3617_s1, 25088 }
  0x4c   : > { %p1323_p8 = scmp.ne.s32.totalorder %s1566_s8, %s1322_s25  ;;  %p1327_p5 = scmp.lt.u32.totalorder %s1566_s8, %s3617_s1 }
  0x4d   : > { %p1328_p6 = scmp.lt.u32.totalorder %s1326_s17, %s1322_s25  ;;  %p1330_p10 = scmp.lt.u32.totalorder %s1322_s25, %s1566_s8 }
  0x4e   : > { %p1324_p12 = pnand %p1323_p8, %p1219_p7 }
  0x4f   : > { %p1329_p9 = por %p1328_p6, %p1327_p5 }
  0x50   : > { %p1325_p4 = pneg %p1324_p12 }
  0x51   : > { %p1331_p11 = por %p1330_p10, %p1329_p9 }
  0x53   : > { %p1332_p13 = pnand %p1331_p11, %p1325_p4 }
  0x55   : > { %1335 = shalt.err (!%p1332_p13)
}
  0x56   : > { %s1336_s4 = scalar_lea.vmem %s195_s24, %s1555_s18  ;;  %s1437_s5 = smov [#allocation5]  }
  0x57   : > { %p1337_p0 = scmp.ne.s32.totalorder %s195_s24, %s1336_s4  ;;  %s1340_s6 = sshll.u32 %s1437_s5, 4  ;;  %s1341_s6 = int_to_ptr.vmem [resolvable:$false] %s1340_s6 }
  0x58   : > { %s1342_s9 = scalar_lea.vmem %s1341_s6, 16384  ;;  %p1343_p3 = scmp.lt.s32.totalorder %s195_s24, %s1341_s6 }
  0x59   : > { %p1338_p2 = pnand %p1337_p0, %p1219_p7  ;;  %p1344_p8 = scmp.lt.s32.totalorder %s1342_s9, %s1336_s4 }
  0x5b   : > { %p1339_p1 = pneg %p1338_p2  ;;  %p1345_p12 = por %p1344_p8, %p1343_p3 }
  0x5d   : > { %p1346_p5 = pnand %p1345_p12, %p1339_p1 }
  0x5f   : > { %1349 = shalt.err (!%p1346_p5)
}
  0x60   : > { %197 = dma.hbm_to_vmem [thread:$0]  (%p1219_p7), %s1566_s8, %s1555_s18, %s195_s24, %s1558_s22  }
  0x61 PF: > { %p1223_p4 = scmp.ge.s32.totalorder %s1434_s14, 1  ;;  %p199_p6 = scmp.lt.s32.totalorder %s1434_s14, 5 }
  0x63   : > { %p200_p9 = pnand %p1223_p4, %p199_p6 }
  0x64   : > { %s205_s21 = sand.u32 (!%p200_p9), 1, %s1418_s10   ;;  %p3794_p10 = scmp.ne.s32.totalorder (!%p200_p9), %s3792_s20, 0 }
  0x65   : > { %203 = sbr.rel (%p200_p9) target bundleno = 428 (0x1ac), region = 28  ;;  %s1224_s28 = sshll.u32 (!%p200_p9), %s205_s21, 9 }
  0x66   : > { %s206_s19 = scalar_lea.sflag (!%p200_p9), [#allocation3], %s205_s21  ;;  %s1592_s30 = scalar_lea.vmem (!%p200_p9), [#allocation2], %s1224_s28 }
  0x6c   : > { %1401 = dma.done.wait (%p3794_p10), %s206_s19, 8192  }
  0x6d   : > { %1403 = vsyncadd (%p3794_p10), %s206_s19, 4294959104  ;;  %s215_s18 = scalar_lea.sflag [#allocation6], %s205_s21  ;;  %s1598_s22 = scalar_lea.vmem [#allocation5], %s1224_s28 }
  0x6e   : > { %1405 = dma.done.wait (%p3794_p10), %s215_s18, 8192  }
  0x6f   : > { %1407 = vsyncadd (%p3794_p10), %s215_s18, 4294959104  ;;  %p1226_p7 = scmp.ne.s32.totalorder %s1426_s12, 0 }
  0x70   : > { %v1438_v0 = vmov (!%p1226_p7), 0.0  }
  0x71   : > { %260 = sbr.rel (%p1226_p7) target bundleno = 120 (0x78), region = 40  ;;  %261 = vst [vmem:[#allocation7] sm:$0xff] (!%p1226_p7), %v1438_v0 }
  0x78 PF: > { %s1227_s7 = sshll.u32 %s1426_s12, 13 }
  0x79   : > { %s1608_s8 = sadd.s32 8192, %s1227_s7 }
  0x7a   : > { %p1228_p11 = scmp.gt.s32.totalorder %s1608_s8, 25000 }
  0x7c   : > { %269 = sbr.rel (%p1228_p11) target bundleno = 210 (0xd2), region = 44 }
  0x83   : > { %v270_v1 = vld [vmem:[%s1592_s30] sm:$0xff]  ;;  %v271_v2 = vld [vmem:[%s1592_s30 + $0x8] sm:$0xff]  ;;  %v272_v3 = vld [vmem:[%s1592_s30 + $0x10] sm:$0xff] }
  0x84   : > { %v273_v4 = vld [vmem:[%s1592_s30 + $0x18] sm:$0xff]  ;;  %v274_v5 = vld [vmem:[%s1592_s30 + $0x20] sm:$0xff]  ;;  %v275_v6 = vld [vmem:[%s1592_s30 + $0x28] sm:$0xff] }
  0x85   : > { %v276_v7 = vld [vmem:[%s1592_s30 + $0x30] sm:$0xff]  ;;  %v277_v8 = vld [vmem:[%s1592_s30 + $0x38] sm:$0xff]  ;;  %v278_v9 = vld [vmem:[%s1592_s30 + $0x40] sm:$0xff] }
  0x86   : > { %v279_v10 = vld [vmem:[%s1592_s30 + $0x48] sm:$0xff]  ;;  %v280_v11 = vld [vmem:[%s1592_s30 + $0x50] sm:$0xff]  ;;  %v281_v12 = vld [vmem:[%s1592_s30 + $0x58] sm:$0xff] }
  0x87   : > { %v282_v13 = vld [vmem:[%s1592_s30 + $0x60] sm:$0xff]  ;;  %v283_v14 = vld [vmem:[%s1592_s30 + $0x68] sm:$0xff]  ;;  %v284_v17 = vld [vmem:[%s1592_s30 + $0x70] sm:$0xff] }
  0x88   : > { %v334_v15 = vld [vmem:[%s1598_s22] sm:$0xff]  ;;  %v335_v16 = vld [vmem:[%s1598_s22 + $0x8] sm:$0xff]  ;;  %v285_v18 = vld [vmem:[%s1592_s30 + $0x78] sm:$0xff] }
  0x89   : > { %v286_v19 = vld [vmem:[%s1592_s30 + $0x80] sm:$0xff]  ;;  %v336_v20 = vld [vmem:[%s1598_s22 + $0x10] sm:$0xff]  ;;  %v337_v21 = vld [vmem:[%s1598_s22 + $0x18] sm:$0xff]  ;;  %v398_v23 = vsub.f32 %v270_v1, %v334_v15  ;;  %v399_v24 = vsub.f32 %v271_v2, %v335_v16 }
  0x8a   : > { %v338_v22 = vld [vmem:[%s1598_s22 + $0x20] sm:$0xff]  ;;  %v287_v25 = vld [vmem:[%s1592_s30 + $0x88] sm:$0xff]  ;;  %v288_v26 = vld [vmem:[%s1592_s30 + $0x90] sm:$0xff]  ;;  %v400_v31 = vsub.f32 %v272_v3, %v336_v20  ;;  %v401_v32 = vsub.f32 %v273_v4, %v337_v21 }
  0x8b   : > { %v289_v27 = vld [vmem:[%s1592_s30 + $0x98] sm:$0xff]  ;;  %v339_v28 = vld [vmem:[%s1598_s22 + $0x28] sm:$0xff]  ;;  %v340_v29 = vld [vmem:[%s1598_s22 + $0x30] sm:$0xff]  ;;  %v402_v33 = vsub.f32 %v274_v5, %v338_v22  ;;  %v1647_v43 = vmul.f32 %v398_v23, %v398_v23  ;;  %v1661_v53 = vmul.f32 %v399_v24, %v399_v24 }
  0x8c   : > { %v341_v30 = vld [vmem:[%s1598_s22 + $0x38] sm:$0xff]  ;;  %v290_v34 = vld [vmem:[%s1592_s30 + $0xa0] sm:$0xff]  ;;  %v291_v35 = vld [vmem:[%s1592_s30 + $0xa8] sm:$0xff]  ;;  %v403_v40 = vsub.f32 %v275_v6, %v339_v28  ;;  %v404_v41 = vsub.f32 %v276_v7, %v340_v29  ;;  %v1675_v63 = vmul.f32 %v400_v31, %v400_v31 }
  0x8d   : > { %v292_v36 = vld [vmem:[%s1592_s30 + $0xb0] sm:$0xff]  ;;  %v342_v37 = vld [vmem:[%s1598_s22 + $0x40] sm:$0xff]  ;;  %v343_v38 = vld [vmem:[%s1598_s22 + $0x48] sm:$0xff]  ;;  %v1645_v42 = vsub.f32 %v277_v8, %v341_v30  ;;  %3795 = vst [vmem:[#allocation11_spill] sm:$0xff] %v1647_v43 }
  0x8e   : > { %v344_v39 = vld [vmem:[%s1598_s22 + $0x50] sm:$0xff]  ;;  %v293_v44 = vld [vmem:[%s1592_s30 + $0xb8] sm:$0xff]  ;;  %v294_v45 = vld [vmem:[%s1592_s30 + $0xc0] sm:$0xff]  ;;  %v1655_v50 = vsub.f32 %v278_v9, %v342_v37  ;;  %v1657_v51 = vsub.f32 %v279_v10, %v343_v38  ;;  %3796 = vst [vmem:[#allocation12_spill] sm:$0xff] %v1661_v53  ;;  %v1689_v9 = vmul.f32 %v401_v32, %v401_v32  ;;  %v1717_v29 = vmul.f32 %v403_v40, %v403_v40 }
  0x8f   : > { %v295_v46 = vld [vmem:[%s1592_s30 + $0xc8] sm:$0xff]  ;;  %v345_v47 = vld [vmem:[%s1598_s22 + $0x58] sm:$0xff]  ;;  %v346_v48 = vld [vmem:[%s1598_s22 + $0x60] sm:$0xff]  ;;  %v1659_v52 = vsub.f32 %v280_v11, %v344_v39  ;;  %3797 = vst [vmem:[#allocation13_spill] sm:$0xff] %v1675_v63  ;;  %v1731_v39 = vmul.f32 %v404_v41, %v404_v41  ;;  %v1747_v41 = vmul.f32 %v1645_v42, %v1645_v42 }
  0x90   : > { %v347_v49 = vld [vmem:[%s1598_s22 + $0x68] sm:$0xff]  ;;  %v296_v54 = vld [vmem:[%s1592_s30 + $0xd0] sm:$0xff]  ;;  %v297_v55 = vld [vmem:[%s1592_s30 + $0xd8] sm:$0xff]  ;;  %v1669_v60 = vsub.f32 %v281_v12, %v345_v47  ;;  %v1671_v61 = vsub.f32 %v282_v13, %v346_v48  ;;  %3798 = vst [vmem:[#allocation14_spill] sm:$0xff] %v1689_v9  ;;  %v1763_v42 = vmul.f32 %v1655_v50, %v1655_v50  ;;  %v1779_v50 = vmul.f32 %v1657_v51, %v1657_v51 }
  0x91   : > { %v298_v56 = vld [vmem:[%s1592_s30 + $0xe0] sm:$0xff]  ;;  %v348_v57 = vld [vmem:[%s1598_s22 + $0x70] sm:$0xff]  ;;  %v349_v58 = vld [vmem:[%s1598_s22 + $0x78] sm:$0xff]  ;;  %v1673_v62 = vsub.f32 %v283_v14, %v347_v49  ;;  %3800 = vst [vmem:[#allocation16_spill] sm:$0xff] %v1717_v29  ;;  %v1795_v51 = vmul.f32 %v1659_v52, %v1659_v52 }
  0x92   : > { %v350_v59 = vld [vmem:[%s1598_s22 + $0x80] sm:$0xff]  ;;  %v299_v0 = vld [vmem:[%s1592_s30 + $0xe8] sm:$0xff]  ;;  %v300_v1 = vld [vmem:[%s1592_s30 + $0xf0] sm:$0xff]  ;;  %v1683_v6 = vsub.f32 %v284_v17, %v348_v57  ;;  %v1685_v7 = vsub.f32 %v285_v18, %v349_v58  ;;  %3801 = vst [vmem:[#allocation17_spill] sm:$0xff] %v1731_v39  ;;  %v1811_v52 = vmul.f32 %v1669_v60, %v1669_v60  ;;  %v1827_v60 = vmul.f32 %v1671_v61, %v1671_v61 }
  0x93   : > { %v301_v2 = vld [vmem:[%s1592_s30 + $0xf8] sm:$0xff]  ;;  %v351_v3 = vld [vmem:[%s1598_s22 + $0x88] sm:$0xff]  ;;  %v352_v4 = vld [vmem:[%s1598_s22 + $0x90] sm:$0xff]  ;;  %v1687_v8 = vsub.f32 %v286_v19, %v350_v59  ;;  %v1703_v19 = vmul.f32 %v402_v33, %v402_v33  ;;  %3802 = vst [vmem:[#allocation18_spill] sm:$0xff] %v1747_v41 }
  0x94   : > { %v353_v5 = vld [vmem:[%s1598_s22 + $0x98] sm:$0xff]  ;;  %v302_v10 = vld [vmem:[%s1592_s30 + $0x100] sm:$0xff]  ;;  %v303_v11 = vld [vmem:[%s1592_s30 + $0x108] sm:$0xff]  ;;  %v1697_v16 = vsub.f32 %v287_v25, %v351_v3  ;;  %v1699_v17 = vsub.f32 %v288_v26, %v352_v4  ;;  %3803 = vst [vmem:[#allocation19_spill] sm:$0xff] %v1763_v42 }
  0x95   : > { %v304_v12 = vld [vmem:[%s1592_s30 + $0x110] sm:$0xff]  ;;  %v354_v13 = vld [vmem:[%s1598_s22 + $0xa0] sm:$0xff]  ;;  %v355_v14 = vld [vmem:[%s1598_s22 + $0xa8] sm:$0xff]  ;;  %v1701_v18 = vsub.f32 %v289_v27, %v353_v5  ;;  %3799 = vst [vmem:[#allocation15_spill] sm:$0xff] %v1703_v19 }
  0x96   : > { %v356_v15 = vld [vmem:[%s1598_s22 + $0xb0] sm:$0xff]  ;;  %v305_v20 = vld [vmem:[%s1592_s30 + $0x118] sm:$0xff]  ;;  %v306_v21 = vld [vmem:[%s1592_s30 + $0x120] sm:$0xff]  ;;  %v1711_v25 = vsub.f32 %v290_v34, %v354_v13  ;;  %v1713_v26 = vsub.f32 %v291_v35, %v355_v14  ;;  %3804 = vst [vmem:[#allocation20_spill] sm:$0xff] %v1779_v50 }
  0x97   : > { %v307_v22 = vld [vmem:[%s1592_s30 + $0x128] sm:$0xff]  ;;  %v357_v23 = vld [vmem:[%s1598_s22 + $0xb8] sm:$0xff]  ;;  %v358_v24 = vld [vmem:[%s1598_s22 + $0xc0] sm:$0xff]  ;;  %v1715_v27 = vsub.f32 %v292_v36, %v356_v15  ;;  %3805 = vst [vmem:[#allocation21_spill] sm:$0xff] %v1795_v51 }
  0x98   : > { %v359_v28 = vld [vmem:[%s1598_s22 + $0xc8] sm:$0xff]  ;;  %v308_v30 = vld [vmem:[%s1592_s30 + $0x130] sm:$0xff]  ;;  %v309_v31 = vld [vmem:[%s1592_s30 + $0x138] sm:$0xff]  ;;  %v1725_v34 = vsub.f32 %v293_v44, %v357_v23  ;;  %v1727_v35 = vsub.f32 %v294_v45, %v358_v24  ;;  %3806 = vst [vmem:[#allocation22_spill] sm:$0xff] %v1811_v52 }
  0x99   : > { %v310_v32 = vld [vmem:[%s1592_s30 + $0x140] sm:$0xff]  ;;  %v360_v33 = vld [vmem:[%s1598_s22 + $0xd0] sm:$0xff]  ;;  %v361_v37 = vld [vmem:[%s1598_s22 + $0xd8] sm:$0xff]  ;;  %v1729_v36 = vsub.f32 %v295_v46, %v359_v28  ;;  %3809 = vst [vmem:[#allocation25_spill] sm:$0xff] %v1827_v60 }
  0x9a   : > { %v362_v38 = vld [vmem:[%s1598_s22 + $0xe0] sm:$0xff]  ;;  %v311_v40 = vld [vmem:[%s1592_s30 + $0x148] sm:$0xff]  ;;  %v312_v47 = vld [vmem:[%s1592_s30 + $0x150] sm:$0xff]  ;;  %v1739_v44 = vsub.f32 %v296_v54, %v360_v33  ;;  %v1741_v45 = vsub.f32 %v297_v55, %v361_v37 }
  0x9b   : > { %v313_v48 = vld [vmem:[%s1592_s30 + $0x158] sm:$0xff]  ;;  %v363_v49 = vld [vmem:[%s1598_s22 + $0xe8] sm:$0xff]  ;;  %v364_v57 = vld [vmem:[%s1598_s22 + $0xf0] sm:$0xff]  ;;  %v1743_v46 = vsub.f32 %v298_v56, %v362_v38 }
  0x9c   : > { %v365_v58 = vld [vmem:[%s1598_s22 + $0xf8] sm:$0xff]  ;;  %v314_v59 = vld [vmem:[%s1592_s30 + $0x160] sm:$0xff]  ;;  %v315_v3 = vld [vmem:[%s1592_s30 + $0x168] sm:$0xff]  ;;  %v1755_v14 = vsub.f32 %v299_v0, %v363_v49  ;;  %v1757_v55 = vsub.f32 %v300_v1, %v364_v57 }
  0x9d   : > { %v316_v4 = vld [vmem:[%s1592_s30 + $0x170] sm:$0xff]  ;;  %v366_v5 = vld [vmem:[%s1598_s22 + $0x100] sm:$0xff]  ;;  %v367_v13 = vld [vmem:[%s1598_s22 + $0x108] sm:$0xff]  ;;  %v1759_v56 = vsub.f32 %v301_v2, %v365_v58 }
  0x9e   : > { %v368_v54 = vld [vmem:[%s1598_s22 + $0x110] sm:$0xff]  ;;  %v317_v15 = vld [vmem:[%s1592_s30 + $0x178] sm:$0xff]  ;;  %v318_v23 = vld [vmem:[%s1592_s30 + $0x180] sm:$0xff]  ;;  %v1771_v37 = vsub.f32 %v302_v10, %v366_v5  ;;  %v1773_v1 = vsub.f32 %v303_v11, %v367_v13 }
  0x9f   : > { %v319_v24 = vld [vmem:[%s1592_s30 + $0x188] sm:$0xff]  ;;  %v369_v28 = vld [vmem:[%s1598_s22 + $0x118] sm:$0xff]  ;;  %v370_v33 = vld [vmem:[%s1598_s22 + $0x120] sm:$0xff]  ;;  %v1775_v2 = vsub.f32 %v304_v12, %v368_v54 }
  0xa0   : > { %v371_v0 = vld [vmem:[%s1598_s22 + $0x128] sm:$0xff]  ;;  %v320_v38 = vld [vmem:[%s1592_s30 + $0x190] sm:$0xff]  ;;  %v321_v49 = vld [vmem:[%s1592_s30 + $0x198] sm:$0xff]  ;;  %v1787_v5 = vsub.f32 %v305_v20, %v369_v28  ;;  %v1789_v11 = vsub.f32 %v306_v21, %v370_v33 }
  0xa1   : > { %v322_v57 = vld [vmem:[%s1592_s30 + $0x1a0] sm:$0xff]  ;;  %v372_v58 = vld [vmem:[%s1598_s22 + $0x130] sm:$0xff]  ;;  %v373_v42 = vld [vmem:[%s1598_s22 + $0x138] sm:$0xff]  ;;  %v1791_v12 = vsub.f32 %v307_v22, %v371_v0 }
  0xa2   : > { %v374_v10 = vld [vmem:[%s1598_s22 + $0x140] sm:$0xff]  ;;  %v323_v13 = vld [vmem:[%s1592_s30 + $0x1a8] sm:$0xff]  ;;  %v324_v54 = vld [vmem:[%s1592_s30 + $0x1b0] sm:$0xff]  ;;  %v1803_v28 = vsub.f32 %v308_v30, %v372_v58  ;;  %v1805_v21 = vsub.f32 %v309_v31, %v373_v42 }
  0xa3   : > { %v325_v50 = vld [vmem:[%s1592_s30 + $0x1b8] sm:$0xff]  ;;  %v375_v41 = vld [vmem:[%s1598_s22 + $0x148] sm:$0xff]  ;;  %v376_v39 = vld [vmem:[%s1598_s22 + $0x150] sm:$0xff]  ;;  %v1807_v22 = vsub.f32 %v310_v32, %v374_v10 }
  0xa4   : > { %v377_v20 = vld [vmem:[%s1598_s22 + $0x158] sm:$0xff]  ;;  %v326_v33 = vld [vmem:[%s1592_s30 + $0x1c0] sm:$0xff]  ;;  %v327_v0 = vld [vmem:[%s1592_s30 + $0x1c8] sm:$0xff]  ;;  %v1819_v58 = vsub.f32 %v311_v40, %v375_v41  ;;  %v1821_v31 = vsub.f32 %v312_v47, %v376_v39 }
  0xa5   : > { %v328_v51 = vld [vmem:[%s1592_s30 + $0x1d0] sm:$0xff]  ;;  %v378_v29 = vld [vmem:[%s1598_s22 + $0x160] sm:$0xff]  ;;  %v379_v19 = vld [vmem:[%s1598_s22 + $0x168] sm:$0xff]  ;;  %v1823_v32 = vsub.f32 %v313_v48, %v377_v20  ;;  %v1843_v48 = vmul.f32 %v1673_v62, %v1673_v62 }
  0xa6   : > { %v380_v30 = vld [vmem:[%s1598_s22 + $0x170] sm:$0xff]  ;;  %3807 = vst [vmem:[#allocation23_spill] sm:$0xff] %v1821_v31  ;;  %v329_v42 = vld [vmem:[%s1592_s30 + $0x1d8] sm:$0xff]  ;;  %v330_v10 = vld [vmem:[%s1592_s30 + $0x1e0] sm:$0xff]  ;;  %v1835_v41 = vsub.f32 %v314_v59, %v378_v29  ;;  %v1837_v39 = vsub.f32 %v315_v3, %v379_v19  ;;  %v1852_v19 = vmul.f32 %v1683_v6, %v1683_v6 }
  0xa7   : > { %3808 = vst [vmem:[#allocation24_spill] sm:$0xff] %v1823_v32  ;;  %v331_v52 = vld [vmem:[%s1592_s30 + $0x1e8] sm:$0xff]  ;;  %v381_v9 = vld [vmem:[%s1598_s22 + $0x178] sm:$0xff]  ;;  %v382_v63 = vld [vmem:[%s1598_s22 + $0x180] sm:$0xff]  ;;  %v1839_v47 = vsub.f32 %v316_v4, %v380_v30 }
  0xa8   : > { %v383_v40 = vld [vmem:[%s1598_s22 + $0x188] sm:$0xff]  ;;  %3810 = vst [vmem:[#allocation26_spill] sm:$0xff] %v1837_v39  ;;  %3812 = vst [vmem:[#allocation28_spill] sm:$0xff] %v1843_v48  ;;  %v332_v61 = vld [vmem:[%s1592_s30 + $0x1f0] sm:$0xff]  ;;  %v445_v32 = vsub.f32 %v317_v15, %v381_v9  ;;  %v446_v31 = vsub.f32 %v318_v23, %v382_v63 }
  0xa9   : > { %3811 = vst [vmem:[#allocation27_spill] sm:$0xff] %v1839_v47  ;;  %v333_v20 = vld [vmem:[%s1592_s30 + $0x1f8] sm:$0xff]  ;;  %v384_v60 = vld [vmem:[%s1598_s22 + $0x190] sm:$0xff]  ;;  %v386_v43 = vld [vmem:[%s1598_s22 + $0x1a0] sm:$0xff]  ;;  %v447_v29 = vsub.f32 %v319_v24, %v383_v40  ;;  %v1859_v47 = vmul.f32 %v1685_v7, %v1685_v7  ;;  %v1866_v40 = vmul.f32 %v1687_v8, %v1687_v8  ;;  %v1873_v7 = vmul.f32 %v1697_v16, %v1697_v16 }
  0xaa   : > { %v385_v53 = vld [vmem:[%s1598_s22 + $0x198] sm:$0xff]  ;;  %3813 = vst [vmem:[#allocation29_spill] sm:$0xff] %v1852_v19  ;;  %v387_v59 = vld [vmem:[%s1598_s22 + $0x1a8] sm:$0xff]  ;;  %v388_v62 = vld [vmem:[%s1598_s22 + $0x1b0] sm:$0xff]  ;;  %v448_v4 = vsub.f32 %v320_v38, %v384_v60  ;;  %v450_v48 = vsub.f32 %v322_v57, %v386_v43  ;;  %v1891_v16 = vmul.f32 %v1713_v26, %v1713_v26  ;;  %v1911_v26 = vmul.f32 %v1739_v44, %v1739_v44 }
  0xab   : > { %v389_v3 = vld [vmem:[%s1598_s22 + $0x1b8] sm:$0xff]  ;;  %v449_v30 = vsub.f32 %v321_v49, %v385_v53  ;;  %3814 = vst [vmem:[#allocation30_spill] sm:$0xff] %v1859_v47  ;;  %v390_v63 = vld [vmem:[%s1598_s22 + $0x1c0] sm:$0xff]  ;;  %v391_v9 = vld [vmem:[%s1598_s22 + $0x1c8] sm:$0xff]  ;;  %v451_v23 = vsub.f32 %v323_v13, %v387_v59  ;;  %v452_v6 = vsub.f32 %v324_v54, %v388_v62  ;;  %v1931_v44 = vmul.f32 %v1759_v56, %v1759_v56 }
  0xac   : > { %v392_v15 = vld [vmem:[%s1598_s22 + $0x1d0] sm:$0xff]  ;;  %v453_v24 = vsub.f32 %v325_v50, %v389_v3  ;;  %v393_v19 = vld [vmem:[%s1598_s22 + $0x1d8] sm:$0xff]  ;;  %v394_v38 = vld [vmem:[%s1598_s22 + $0x1e0] sm:$0xff]  ;;  %v454_v43 = vsub.f32 %v326_v33, %v390_v63  ;;  %v455_v49 = vsub.f32 %v327_v0, %v391_v9  ;;  %v1879_v50 = vmul.f32 %v1699_v17, %v1699_v17 }
  0xad   : > { %v395_v53 = vld [vmem:[%s1598_s22 + $0x1e8] sm:$0xff]  ;;  %v456_v57 = vsub.f32 %v328_v51, %v392_v15  ;;  %v396_v60 = vld [vmem:[%s1598_s22 + $0x1f0] sm:$0xff]  ;;  %v397_v47 = vld [vmem:[%s1598_s22 + $0x1f8] sm:$0xff]  ;;  %v457_v39 = vsub.f32 %v329_v42, %v393_v19  ;;  %v458_v13 = vsub.f32 %v330_v10, %v394_v38  ;;  %v1883_v33 = vmul.f32 %v1701_v18, %v1701_v18  ;;  %3819 = vst [vmem:[#allocation35_spill] sm:$0xff] %v1931_v44 }
  0xae   : > { %v459_v54 = vsub.f32 %v331_v52, %v395_v53  ;;  %v460_v8 = vsub.f32 %v332_v61, %v396_v60  ;;  %v461_v59 = vsub.f32 %v333_v20, %v397_v47  ;;  %v1887_v51 = vmul.f32 %v1711_v25, %v1711_v25  ;;  %v3820_v10 = vld [vmem:[#allocation23_spill] sm:$0xff]  ;;  %v3821_v47 = vld [vmem:[#allocation24_spill] sm:$0xff] }
  0xaf   : > { %v1895_v52 = vmul.f32 %v1715_v27, %v1715_v27  ;;  %v1899_v17 = vmul.f32 %v1725_v34, %v1725_v34  ;;  %v1903_v18 = vmul.f32 %v1727_v35, %v1727_v35  ;;  %v1907_v25 = vmul.f32 %v1729_v36, %v1729_v36  ;;  %v3822_v61 = vld [vmem:[#allocation26_spill] sm:$0xff] }
  0xb0   : > { %v1915_v27 = vmul.f32 %v1741_v45, %v1741_v45  ;;  %v1919_v34 = vmul.f32 %v1743_v46, %v1743_v46  ;;  %v1923_v35 = vmul.f32 %v1755_v14, %v1755_v14  ;;  %v1927_v36 = vmul.f32 %v1757_v55, %v1757_v55  ;;  %v3823_v20 = vld [vmem:[#allocation27_spill] sm:$0xff] }
  0xb1   : > { %v494_v45 = vmul.f32 %v1771_v37, %v1771_v37  ;;  %v495_v0 = vmul.f32 %v1773_v1, %v1773_v1  ;;  %v496_v46 = vmul.f32 %v1775_v2, %v1775_v2  ;;  %v497_v14 = vmul.f32 %v1787_v5, %v1787_v5 }
  0xb2   : > { %3815 = vst [vmem:[#allocation31_spill] sm:$0xff] %v1915_v27  ;;  %3816 = vst [vmem:[#allocation32_spill] sm:$0xff] %v1919_v34  ;;  %v498_v55 = vmul.f32 %v1789_v11, %v1789_v11  ;;  %v499_v42 = vmul.f32 %v1791_v12, %v1791_v12  ;;  %v500_v56 = vmul.f32 %v1803_v28, %v1803_v28  ;;  %v3834_v27 = vld [vmem:[#allocation21_spill] sm:$0xff] }
  0xb3   : > { %3817 = vst [vmem:[#allocation33_spill] sm:$0xff] %v1923_v35  ;;  %3818 = vst [vmem:[#allocation34_spill] sm:$0xff] %v1927_v36  ;;  %v501_v37 = vmul.f32 %v1805_v21, %v1805_v21  ;;  %v502_v1 = vmul.f32 %v1807_v22, %v1807_v22  ;;  %v503_v2 = vmul.f32 %v1819_v58, %v1819_v58  ;;  %v3824_v35 = vld [vmem:[#allocation11_spill] sm:$0xff] }
  0xb4   : > { %v504_v5 = vmul.f32 %v3820_v10, %v3820_v10  ;;  %v505_v11 = vmul.f32 %v3821_v47, %v3821_v47  ;;  %v506_v12 = vmul.f32 %v1835_v41, %v1835_v41  ;;  %v507_v28 = vmul.f32 %v3822_v61, %v3822_v61 }
  0xb5   : > { %v508_v21 = vmul.f32 %v3823_v20, %v3823_v20  ;;  %v509_v19 = vmul.f32 %v445_v32, %v445_v32  ;;  %v510_v22 = vmul.f32 %v446_v31, %v446_v31  ;;  %v511_v62 = vmul.f32 %v447_v29, %v447_v29  ;;  %v3825_v20 = vld [vmem:[#allocation12_spill] sm:$0xff]  ;;  %v3826_v31 = vld [vmem:[#allocation13_spill] sm:$0xff] }
  0xb6   : > { %v512_v3 = vmul.f32 %v448_v4, %v448_v4  ;;  %v513_v58 = vmul.f32 %v449_v30, %v449_v30  ;;  %v514_v63 = vmul.f32 %v450_v48, %v450_v48  ;;  %v515_v9 = vmul.f32 %v451_v23, %v451_v23  ;;  %v3827_v4 = vld [vmem:[#allocation14_spill] sm:$0xff]  ;;  %v3828_v48 = vld [vmem:[#allocation15_spill] sm:$0xff] }
  0xb7   : > { %v516_v15 = vmul.f32 %v452_v6, %v452_v6  ;;  %v517_v38 = vmul.f32 %v453_v24, %v453_v24  ;;  %v518_v53 = vmul.f32 %v454_v43, %v454_v43  ;;  %v519_v60 = vmul.f32 %v455_v49, %v455_v49  ;;  %v3829_v6 = vld [vmem:[#allocation16_spill] sm:$0xff]  ;;  %v3830_v43 = vld [vmem:[#allocation17_spill] sm:$0xff] }
  0xb8   : > { %v520_v10 = vmul.f32 %v456_v57, %v456_v57  ;;  %v521_v47 = vmul.f32 %v457_v39, %v457_v39  ;;  %v522_v41 = vmul.f32 %v458_v13, %v458_v13  ;;  %v523_v44 = vmul.f32 %v459_v54, %v459_v54  ;;  %v3831_v57 = vld [vmem:[#allocation18_spill] sm:$0xff]  ;;  %v3832_v13 = vld [vmem:[#allocation19_spill] sm:$0xff] }
  0xb9   : > { %v524_v36 = vmul.f32 %v460_v8, %v460_v8  ;;  %v525_v61 = vmul.f32 %v461_v59, %v461_v59  ;;  %v526_v34 = vadd.f32 %v494_v45, %v3824_v35  ;;  %v527_v32 = vadd.f32 %v495_v0, %v3825_v20  ;;  %v3833_v8 = vld [vmem:[#allocation20_spill] sm:$0xff]  ;;  %v3835_v45 = vld [vmem:[#allocation22_spill] sm:$0xff]  ;;  %v3836_v20 = vld [vmem:[#allocation25_spill] sm:$0xff] }
  0xba   : > { %v528_v29 = vadd.f32 %v496_v46, %v3826_v31  ;;  %v529_v30 = vadd.f32 %v497_v14, %v3827_v4  ;;  %v530_v23 = vadd.f32 %v498_v55, %v3828_v48  ;;  %v531_v24 = vadd.f32 %v499_v42, %v3829_v6  ;;  %v3837_v31 = vld [vmem:[#allocation28_spill] sm:$0xff]  ;;  %v3838_v4 = vld [vmem:[#allocation29_spill] sm:$0xff]  ;;  %v3839_v48 = vld [vmem:[#allocation30_spill] sm:$0xff] }
  0xbb   : > { %v532_v49 = vadd.f32 %v500_v56, %v3830_v43  ;;  %v533_v39 = vadd.f32 %v501_v37, %v3831_v57  ;;  %v534_v54 = vadd.f32 %v502_v1, %v3832_v13  ;;  %v535_v59 = vadd.f32 %v503_v2, %v3833_v8  ;;  %v589_v8 = vld [vmem:[#allocation7] sm:$0xff] }
  0xbc   : > { %v536_v35 = vadd.f32 %v504_v5, %v3834_v27  ;;  %v537_v0 = vadd.f32 %v505_v11, %v3835_v45  ;;  %v538_v46 = vadd.f32 %v506_v12, %v3836_v20  ;;  %v539_v14 = vadd.f32 %v507_v28, %v3837_v31 }
  0xbd   : > { %v540_v55 = vadd.f32 %v508_v21, %v3838_v4  ;;  %v541_v42 = vadd.f32 %v509_v19, %v3839_v48  ;;  %v542_v56 = vadd.f32 %v510_v22, %v1866_v40  ;;  %v543_v37 = vadd.f32 %v511_v62, %v1873_v7  ;;  %v3840_v19 = vld [vmem:[#allocation31_spill] sm:$0xff]  ;;  %v3841_v22 = vld [vmem:[#allocation32_spill] sm:$0xff]  ;;  %v3842_v62 = vld [vmem:[#allocation33_spill] sm:$0xff] }
  0xbe   : > { %v544_v1 = vadd.f32 %v512_v3, %v1879_v50  ;;  %v545_v2 = vadd.f32 %v513_v58, %v1883_v33  ;;  %v546_v27 = vadd.f32 %v514_v63, %v1887_v51  ;;  %v547_v5 = vadd.f32 %v515_v9, %v1891_v16  ;;  %v3843_v3 = vld [vmem:[#allocation34_spill] sm:$0xff]  ;;  %v3844_v58 = vld [vmem:[#allocation35_spill] sm:$0xff] }
  0xbf   : > { %v548_v11 = vadd.f32 %v516_v15, %v1895_v52  ;;  %v549_v12 = vadd.f32 %v517_v38, %v1899_v17  ;;  %v550_v28 = vadd.f32 %v518_v53, %v1903_v18  ;;  %v551_v21 = vadd.f32 %v519_v60, %v1907_v25 }
  0xc0   : > { %v552_v40 = vadd.f32 %v520_v10, %v1911_v26  ;;  %v553_v7 = vadd.f32 %v521_v47, %v3840_v19  ;;  %v554_v50 = vadd.f32 %v522_v41, %v3841_v22  ;;  %v555_v33 = vadd.f32 %v523_v44, %v3842_v62 }
  0xc1   : > { %v556_v51 = vadd.f32 %v524_v36, %v3843_v3  ;;  %v557_v16 = vadd.f32 %v525_v61, %v3844_v58  ;;  %v558_v63 = vadd.f32 %v542_v56, %v526_v34  ;;  %v559_v52 = vadd.f32 %v543_v37, %v527_v32 }
  0xc2   : > { %v560_v9 = vadd.f32 %v544_v1, %v528_v29  ;;  %v561_v17 = vadd.f32 %v545_v2, %v529_v30  ;;  %v562_v15 = vadd.f32 %v546_v27, %v530_v23  ;;  %v563_v18 = vadd.f32 %v547_v5, %v531_v24 }
  0xc3   : > { %v564_v38 = vadd.f32 %v548_v11, %v532_v49  ;;  %v565_v25 = vadd.f32 %v549_v12, %v533_v39  ;;  %v566_v53 = vadd.f32 %v550_v28, %v534_v54  ;;  %v567_v26 = vadd.f32 %v551_v21, %v535_v59 }
  0xc4   : > { %v568_v60 = vadd.f32 %v552_v40, %v536_v35  ;;  %v569_v10 = vadd.f32 %v553_v7, %v537_v0  ;;  %v570_v47 = vadd.f32 %v554_v50, %v538_v46  ;;  %v571_v41 = vadd.f32 %v555_v33, %v539_v14 }
  0xc5   : > { %v572_v6 = vadd.f32 %v556_v51, %v540_v55  ;;  %v573_v44 = vadd.f32 %v557_v16, %v541_v42  ;;  %v574_v43 = vadd.f32 %v566_v53, %v558_v63  ;;  %v575_v36 = vadd.f32 %v567_v26, %v559_v52 }
  0xc6   : > { %v576_v57 = vadd.f32 %v568_v60, %v560_v9  ;;  %v577_v61 = vadd.f32 %v569_v10, %v561_v17  ;;  %v578_v34 = vadd.f32 %v570_v47, %v562_v15  ;;  %v579_v32 = vadd.f32 %v571_v41, %v563_v18 }
  0xc7   : > { %v580_v29 = vadd.f32 %v572_v6, %v564_v38  ;;  %v581_v30 = vadd.f32 %v573_v44, %v565_v25 }
  0xc8   : > { %v582_v23 = vadd.f32 %v578_v34, %v574_v43  ;;  %v583_v24 = vadd.f32 %v579_v32, %v575_v36 }
  0xc9   : > { %v584_v49 = vadd.f32 %v580_v29, %v576_v57  ;;  %v585_v39 = vadd.f32 %v581_v30, %v577_v61 }
  0xcb   : > { %v586_v13 = vadd.f32 %v584_v49, %v582_v23  ;;  %v587_v54 = vadd.f32 %v585_v39, %v583_v24 }
  0xcd   : > { %v588_v59 = vadd.f32 %v587_v54, %v586_v13 }
  0xcf   : > { %v590_v35 = vadd.f32 %v589_v8, %v588_v59 }
  0xd1   : > { %591 = vst [vmem:[#allocation7] sm:$0xff] %v590_v35 }
  0xd2 PF: > { %p1229_p13 = scmp.le.s32.totalorder %s1608_s8, 25000 }
  0xd4   : > { %595 = sbr.rel (%p1229_p13) target bundleno = 403 (0x193), region = 48 }
  0xdb   : > { %v596_v45 = vlaneseq  ;;  %s2132_s20 = ssub.s32 25000, %s1227_s7  ;;  %v2147_v61 = vld [vmem:[%s1592_s30] sm:$0xff]  ;;  %v2162_v23 = vld [vmem:[%s1592_s30 + $0x8] sm:$0xff]  ;;  %v2165_v24 = vld [vmem:[%s1592_s30 + $0x10] sm:$0xff] }
  0xdc   : > { %3885 = vst [vmem:[#allocation76_spill] sm:$0xff] %v2147_v61  ;;  %v2150_v34 = vld [vmem:[%s1598_s22] sm:$0xff]  ;;  %3890 = vst [vmem:[#allocation81_spill] sm:$0xff] %v2162_v23  ;;  %v2168_v49 = vld [vmem:[%s1592_s30 + $0x18] sm:$0xff] }
  0xdd   : > { %v1996_v0 = vand.u32 127, %v596_v45  ;;  %3886 = vst [vmem:[#allocation77_spill] sm:$0xff] %v2150_v34  ;;  %3891 = vst [vmem:[#allocation82_spill] sm:$0xff] %v2165_v24  ;;  %v2171_v39 = vld [vmem:[%s1592_s30 + $0x20] sm:$0xff]  ;;  %v2174_v13 = vld [vmem:[%s1598_s22 + $0x8] sm:$0xff] }
  0xde   : > { %3892 = vst [vmem:[#allocation83_spill] sm:$0xff] %v2168_v49  ;;  %3893 = vst [vmem:[#allocation84_spill] sm:$0xff] %v2171_v39  ;;  %v2177_v54 = vld [vmem:[%s1598_s22 + $0x10] sm:$0xff]  ;;  %v2180_v8 = vld [vmem:[%s1598_s22 + $0x18] sm:$0xff] }
  0xdf   : > { %v1999_v20 = vadd.s32 128, %v1996_v0  ;;  %v2002_v46 = vadd.s32 256, %v1996_v0  ;;  %v2005_v31 = vadd.s32 384, %v1996_v0  ;;  %v2008_v14 = vadd.s32 512, %v1996_v0  ;;  %3894 = vst [vmem:[#allocation85_spill] sm:$0xff] %v2174_v13  ;;  %3895 = vst [vmem:[#allocation86_spill] sm:$0xff] %v2177_v54 }
  0xe0   : > { %v2011_v4 = vadd.s32 640, %v1996_v0  ;;  %v2014_v55 = vadd.s32 768, %v1996_v0  ;;  %v2017_v48 = vadd.s32 896, %v1996_v0  ;;  %v2020_v42 = vadd.s32 1024, %v1996_v0  ;;  %3896 = vst [vmem:[#allocation87_spill] sm:$0xff] %v2180_v8  ;;  %v2183_v59 = vld [vmem:[%s1598_s22 + $0x20] sm:$0xff] }
  0xe1   : > { %v2023_v56 = vadd.s32 1152, %v1996_v0  ;;  %v2026_v37 = vadd.s32 1280, %v1996_v0  ;;  %v2029_v1 = vadd.s32 1408, %v1996_v0  ;;  %v2032_v2 = vadd.s32 1536, %v1996_v0  ;;  %3897 = vst [vmem:[#allocation88_spill] sm:$0xff] %v2183_v59  ;;  %v2361_v34 = vld [vmem:[%s1592_s30 + $0xd8] sm:$0xff] }
  0xe2   : > { %v2035_v27 = vadd.s32 1664, %v1996_v0  ;;  %v2038_v5 = vadd.s32 1792, %v1996_v0  ;;  %v2041_v11 = vadd.s32 1920, %v1996_v0  ;;  %v2044_v12 = vadd.s32 2048, %v1996_v0  ;;  %3951 = vst [vmem:[#allocation142_spill] sm:$0xff] %v2361_v34  ;;  %v2364_v13 = vld [vmem:[%s1592_s30 + $0xe0] sm:$0xff] }
  0xe3   : > { %3845 = vst [vmem:[#allocation36_spill] sm:$0xff] %v2023_v56  ;;  %3846 = vst [vmem:[#allocation37_spill] sm:$0xff] %v2026_v37  ;;  %v2047_v28 = vadd.s32 2176, %v1996_v0  ;;  %v2050_v21 = vadd.s32 2304, %v1996_v0  ;;  %v2053_v40 = vadd.s32 2432, %v1996_v0  ;;  %v2056_v19 = vadd.s32 2560, %v1996_v0 }
  0xe4   : > { %3847 = vst [vmem:[#allocation38_spill] sm:$0xff] %v2029_v1  ;;  %3848 = vst [vmem:[#allocation39_spill] sm:$0xff] %v2032_v2  ;;  %v2059_v7 = vadd.s32 2688, %v1996_v0  ;;  %v2062_v22 = vadd.s32 2816, %v1996_v0  ;;  %v2065_v50 = vadd.s32 2944, %v1996_v0  ;;  %v2068_v62 = vadd.s32 3072, %v1996_v0 }
  0xe5   : > { %3849 = vst [vmem:[#allocation40_spill] sm:$0xff] %v2035_v27  ;;  %3850 = vst [vmem:[#allocation41_spill] sm:$0xff] %v2038_v5  ;;  %v2071_v33 = vadd.s32 3200, %v1996_v0  ;;  %v2074_v3 = vadd.s32 3328, %v1996_v0  ;;  %v2077_v51 = vadd.s32 3456, %v1996_v0  ;;  %v2080_v58 = vadd.s32 3584, %v1996_v0 }
  0xe6   : > { %3851 = vst [vmem:[#allocation42_spill] sm:$0xff] %v2041_v11  ;;  %3852 = vst [vmem:[#allocation43_spill] sm:$0xff] %v2044_v12  ;;  %v2083_v16 = vadd.s32 3712, %v1996_v0  ;;  %v2086_v63 = vadd.s32 3840, %v1996_v0  ;;  %v2089_v52 = vadd.s32 3968, %v1996_v0  ;;  %v2092_v9 = vadd.s32 4096, %v1996_v0 }
  0xe7   : > { %3853 = vst [vmem:[#allocation44_spill] sm:$0xff] %v2047_v28  ;;  %3854 = vst [vmem:[#allocation45_spill] sm:$0xff] %v2050_v21  ;;  %v2095_v17 = vadd.s32 4224, %v1996_v0  ;;  %v2098_v15 = vadd.s32 4352, %v1996_v0  ;;  %v2101_v18 = vadd.s32 4480, %v1996_v0  ;;  %v2104_v38 = vadd.s32 4608, %v1996_v0 }
  0xe8   : > { %3855 = vst [vmem:[#allocation46_spill] sm:$0xff] %v2053_v40  ;;  %3856 = vst [vmem:[#allocation47_spill] sm:$0xff] %v2056_v19  ;;  %v2107_v25 = vadd.s32 4736, %v1996_v0  ;;  %v2110_v53 = vadd.s32 4864, %v1996_v0  ;;  %v2113_v26 = vadd.s32 4992, %v1996_v0  ;;  %v2116_v60 = vadd.s32 5120, %v1996_v0 }
  0xe9   : > { %3857 = vst [vmem:[#allocation48_spill] sm:$0xff] %v2059_v7  ;;  %3858 = vst [vmem:[#allocation49_spill] sm:$0xff] %v2062_v22  ;;  %v2119_v10 = vadd.s32 5248, %v1996_v0  ;;  %v2122_v47 = vadd.s32 5376, %v1996_v0  ;;  %v2125_v41 = vadd.s32 5504, %v1996_v0  ;;  %v2128_v6 = vadd.s32 5632, %v1996_v0 }
  0xea   : > { %3859 = vst [vmem:[#allocation50_spill] sm:$0xff] %v2065_v50  ;;  %3860 = vst [vmem:[#allocation51_spill] sm:$0xff] %v2068_v62  ;;  %v2135_v44 = vadd.s32 5760, %v1996_v0  ;;  %v2138_v43 = vadd.s32 5888, %v1996_v0  ;;  %v2141_v36 = vadd.s32 6016, %v1996_v0  ;;  %v2144_v57 = vadd.s32 6144, %v1996_v0 }
  0xeb   : > { %3861 = vst [vmem:[#allocation52_spill] sm:$0xff] %v2071_v33  ;;  %3862 = vst [vmem:[#allocation53_spill] sm:$0xff] %v2074_v3  ;;  %v2153_v32 = vadd.s32 6272, %v1996_v0  ;;  %v2156_v29 = vadd.s32 6400, %v1996_v0  ;;  %v2159_v30 = vadd.s32 6528, %v1996_v0  ;;  %v2186_v35 = vadd.s32 6656, %v1996_v0 }
  0xec   : > { %3863 = vst [vmem:[#allocation54_spill] sm:$0xff] %v2077_v51  ;;  %3864 = vst [vmem:[#allocation55_spill] sm:$0xff] %v2080_v58  ;;  %v2189_v45 = vadd.s32 6784, %v1996_v0  ;;  %v2288_v58 = vadd.s32 7808, %v1996_v0  ;;  %v2291_v51 = vadd.s32 7936, %v1996_v0  ;;  %v2294_v3 = vadd.s32 8064, %v1996_v0 }
  0xed   : > { %3865 = vst [vmem:[#allocation56_spill] sm:$0xff] %v2083_v16  ;;  %3866 = vst [vmem:[#allocation57_spill] sm:$0xff] %v2086_v63  ;;  %v2279_v63 = vld [vmem:[%s1598_s22 + $0x70] sm:$0xff]  ;;  %v2285_v16 = vld [vmem:[%s1598_s22 + $0x80] sm:$0xff] }
  0xee   : > { %3867 = vst [vmem:[#allocation58_spill] sm:$0xff] %v2089_v52  ;;  %3868 = vst [vmem:[#allocation59_spill] sm:$0xff] %v2092_v9  ;;  %v2267_v9 = vld [vmem:[%s1592_s30 + $0x70] sm:$0xff]  ;;  %v2270_v52 = vld [vmem:[%s1592_s30 + $0x78] sm:$0xff] }
  0xef   : > { %3869 = vst [vmem:[#allocation60_spill] sm:$0xff] %v2095_v17  ;;  %3870 = vst [vmem:[#allocation61_spill] sm:$0xff] %v2098_v15  ;;  %v2261_v15 = vstv %s2132_s20  ;;  %v2264_v17 = vld [vmem:[%s1592_s30 + $0x68] sm:$0xff]  ;;  %v2300_v62 = vld [vmem:[%s1592_s30 + $0x90] sm:$0xff] }
  0xf0   : > { %3871 = vst [vmem:[#allocation62_spill] sm:$0xff] %v2101_v18  ;;  %3872 = vst [vmem:[#allocation63_spill] sm:$0xff] %v2104_v38  ;;  %v2255_v38 = vadd.s32 7552, %v1996_v0  ;;  %v2258_v18 = vadd.s32 7680, %v1996_v0  ;;  %v2297_v33 = vld [vmem:[%s1592_s30 + $0x88] sm:$0xff]  ;;  %v2303_v50 = vld [vmem:[%s1592_s30 + $0x98] sm:$0xff]  ;;  %vm663_vm0 = vcmp.lt.s32.totalorder %v1996_v0, %v2261_v15  ;;  %vm664_vm1 = vcmp.lt.s32.totalorder %v1999_v20, %v2261_v15 }
  0xf1   : > { %3873 = vst [vmem:[#allocation64_spill] sm:$0xff] %v2107_v25  ;;  %3874 = vst [vmem:[#allocation65_spill] sm:$0xff] %v2110_v53  ;;  %v2246_v53 = vld [vmem:[%s1598_s22 + $0x58] sm:$0xff]  ;;  %v2252_v25 = vadd.s32 7424, %v1996_v0  ;;  %v2306_v22 = vld [vmem:[%s1592_s30 + $0xa0] sm:$0xff]  ;;  %vm665_vm2 = vcmp.lt.s32.totalorder %v2002_v46, %v2261_v15  ;;  %vm666_vm3 = vcmp.lt.s32.totalorder %v2005_v31, %v2261_v15  ;;  %vm667_vm4 = vcmp.lt.s32.totalorder %v2008_v14, %v2261_v15 }
  0xf2   : > { %3875 = vst [vmem:[#allocation66_spill] sm:$0xff] %v2113_v26  ;;  %3876 = vst [vmem:[#allocation67_spill] sm:$0xff] %v2116_v60  ;;  %v2234_v60 = vld [vmem:[%s1592_s30 + $0x58] sm:$0xff]  ;;  %v2237_v26 = vld [vmem:[%s1592_s30 + $0x60] sm:$0xff]  ;;  %vm668_vm5 = vcmp.lt.s32.totalorder %v2011_v4, %v2261_v15  ;;  %vm669_vm6 = vcmp.lt.s32.totalorder %v2014_v55, %v2261_v15  ;;  %vm670_vm7 = vcmp.lt.s32.totalorder %v2017_v48, %v2261_v15 }
  0xf3   : > { %3877 = vst [vmem:[#allocation68_spill] sm:$0xff] %v2119_v10  ;;  %3878 = vst [vmem:[#allocation69_spill] sm:$0xff] %v2122_v47  ;;  %v2228_v47 = vld [vmem:[%s1592_s30 + $0x48] sm:$0xff]  ;;  %v2231_v10 = vld [vmem:[%s1592_s30 + $0x50] sm:$0xff]  ;;  %vm671_vm8 = vcmp.lt.s32.totalorder %v2020_v42, %v2261_v15 }
  0xf4   : > { %3879 = vst [vmem:[#allocation70_spill] sm:$0xff] %v2125_v41  ;;  %3880 = vst [vmem:[#allocation71_spill] sm:$0xff] %v2128_v6  ;;  %v2222_v6 = vadd.s32 7168, %v1996_v0  ;;  %v2225_v41 = vadd.s32 7296, %v1996_v0  ;;  %v2309_v7 = vld [vmem:[%s1598_s22 + $0x88] sm:$0xff]  ;;  %v2318_v19 = vld [vmem:[%s1598_s22 + $0xa0] sm:$0xff] }
  0xf5   : > { %3881 = vst [vmem:[#allocation72_spill] sm:$0xff] %v2135_v44  ;;  %3882 = vst [vmem:[#allocation73_spill] sm:$0xff] %v2138_v43  ;;  %v2210_v43 = vld [vmem:[%s1598_s22 + $0x30] sm:$0xff]  ;;  %v2219_v44 = vadd.s32 7040, %v1996_v0  ;;  %v2323_v40 = vld [vmem:[%s1592_s30 + $0xa8] sm:$0xff] }
  0xf6   : > { %3883 = vst [vmem:[#allocation74_spill] sm:$0xff] %v2141_v36  ;;  %3884 = vst [vmem:[#allocation75_spill] sm:$0xff] %v2144_v57  ;;  %v2201_v57 = vld [vmem:[%s1592_s30 + $0x38] sm:$0xff]  ;;  %v2204_v36 = vld [vmem:[%s1592_s30 + $0x40] sm:$0xff] }
  0xf7   : > { %3887 = vst [vmem:[#allocation78_spill] sm:$0xff] %v2153_v32  ;;  %3888 = vst [vmem:[#allocation79_spill] sm:$0xff] %v2156_v29  ;;  %v2195_v29 = vld [vmem:[%s1592_s30 + $0x28] sm:$0xff]  ;;  %v2198_v32 = vld [vmem:[%s1592_s30 + $0x30] sm:$0xff] }
  0xf8   : > { %3889 = vst [vmem:[#allocation80_spill] sm:$0xff] %v2159_v30  ;;  %3898 = vst [vmem:[#allocation89_spill] sm:$0xff] %v2186_v35  ;;  %v2192_v30 = vadd.s32 6912, %v1996_v0  ;;  %v2207_v35 = vld [vmem:[%s1598_s22 + $0x28] sm:$0xff]  ;;  %v2326_v21 = vld [vmem:[%s1592_s30 + $0xb0] sm:$0xff] }
  0xf9   : > { %3899 = vst [vmem:[#allocation90_spill] sm:$0xff] %v2189_v45  ;;  %3901 = vst [vmem:[#allocation92_spill] sm:$0xff] %v2195_v29  ;;  %v2213_v45 = vld [vmem:[%s1598_s22 + $0x38] sm:$0xff]  ;;  %v2332_v12 = vld [vmem:[%s1592_s30 + $0xc0] sm:$0xff] }
  0xfa   : > { %3900 = vst [vmem:[#allocation91_spill] sm:$0xff] %v2192_v30  ;;  %3902 = vst [vmem:[#allocation93_spill] sm:$0xff] %v2198_v32  ;;  %v2216_v30 = vld [vmem:[%s1598_s22 + $0x40] sm:$0xff]  ;;  %v2329_v28 = vld [vmem:[%s1592_s30 + $0xb8] sm:$0xff] }
  0xfb   : > { %3903 = vst [vmem:[#allocation94_spill] sm:$0xff] %v2201_v57  ;;  %3904 = vst [vmem:[#allocation95_spill] sm:$0xff] %v2204_v36  ;;  %v2335_v11 = vld [vmem:[%s1598_s22 + $0xa8] sm:$0xff]  ;;  %v2338_v5 = vld [vmem:[%s1598_s22 + $0xb0] sm:$0xff] }
  0xfc   : > { %3905 = vst [vmem:[#allocation96_spill] sm:$0xff] %v2207_v35  ;;  %3906 = vst [vmem:[#allocation97_spill] sm:$0xff] %v2210_v43  ;;  %v2341_v27 = vld [vmem:[%s1598_s22 + $0xb8] sm:$0xff]  ;;  %v2355_v37 = vld [vmem:[%s1592_s30 + $0xc8] sm:$0xff] }
  0xfd   : > { %3907 = vst [vmem:[#allocation98_spill] sm:$0xff] %v2213_v45  ;;  %3908 = vst [vmem:[#allocation99_spill] sm:$0xff] %v2216_v30  ;;  %v2358_v56 = vld [vmem:[%s1592_s30 + $0xd0] sm:$0xff]  ;;  %v2367_v61 = vld [vmem:[%s1598_s22 + $0xc8] sm:$0xff] }
  0xfe   : > { %3909 = vst [vmem:[#allocation100_spill] sm:$0xff] %v2219_v44  ;;  %3910 = vst [vmem:[#allocation101_spill] sm:$0xff] %v2222_v6  ;;  %v2240_v44 = vld [vmem:[%s1598_s22 + $0x48] sm:$0xff]  ;;  %v2243_v6 = vld [vmem:[%s1598_s22 + $0x50] sm:$0xff] }
  0xff   : > { %3911 = vst [vmem:[#allocation102_spill] sm:$0xff] %v2225_v41  ;;  %3912 = vst [vmem:[#allocation103_spill] sm:$0xff] %v2231_v10  ;;  %v2249_v41 = vld [vmem:[%s1598_s22 + $0x60] sm:$0xff]  ;;  %v2370_v2 = vld [vmem:[%s1598_s22 + $0xd0] sm:$0xff] }
 0x100   : > { %3913 = vst [vmem:[#allocation104_spill] sm:$0xff] %v2234_v60  ;;  %3914 = vst [vmem:[#allocation105_spill] sm:$0xff] %v2237_v26  ;;  %v2373_v8 = vld [vmem:[%s1598_s22 + $0xd8] sm:$0xff]  ;;  %v2376_v1 = vld [vmem:[%s1598_s22 + $0xe0] sm:$0xff] }
 0x101   : > { %3915 = vst [vmem:[#allocation106_spill] sm:$0xff] %v2240_v44  ;;  %3916 = vst [vmem:[#allocation107_spill] sm:$0xff] %v2243_v6  ;;  %v2387_v24 = vld [vmem:[%s1592_s30 + $0xe8] sm:$0xff]  ;;  %v2390_v23 = vld [vmem:[%s1592_s30 + $0xf0] sm:$0xff] }
 0x102   : > { %3917 = vst [vmem:[#allocation108_spill] sm:$0xff] %v2246_v53  ;;  %3918 = vst [vmem:[#allocation109_spill] sm:$0xff] %v2249_v41  ;;  %v2393_v59 = vld [vmem:[%s1592_s30 + $0xf8] sm:$0xff]  ;;  %v2396_v35 = vld [vmem:[%s1592_s30 + $0x100] sm:$0xff] }
 0x103   : > { %3919 = vst [vmem:[#allocation110_spill] sm:$0xff] %v2252_v25  ;;  %3920 = vst [vmem:[#allocation111_spill] sm:$0xff] %v2255_v38  ;;  %v2273_v25 = vld [vmem:[%s1592_s30 + $0x80] sm:$0xff]  ;;  %v2276_v38 = vld [vmem:[%s1598_s22 + $0x68] sm:$0xff] }
 0x104   : > { %3921 = vst [vmem:[#allocation112_spill] sm:$0xff] %v2258_v18  ;;  %3922 = vst [vmem:[#allocation113_spill] sm:$0xff] %v2264_v17  ;;  %v2282_v18 = vld [vmem:[%s1598_s22 + $0x78] sm:$0xff]  ;;  %v2399_v39 = vld [vmem:[%s1598_s22 + $0xe8] sm:$0xff] }
 0x105   : > { %3923 = vst [vmem:[#allocation114_spill] sm:$0xff] %v2267_v9  ;;  %3924 = vst [vmem:[#allocation115_spill] sm:$0xff] %v2270_v52  ;;  %v2402_v49 = vld [vmem:[%s1598_s22 + $0xf0] sm:$0xff]  ;;  %v2405_v45 = vld [vmem:[%s1598_s22 + $0xf8] sm:$0xff] }
 0x106   : > { %3925 = vst [vmem:[#allocation116_spill] sm:$0xff] %v2273_v25  ;;  %3926 = vst [vmem:[#allocation117_spill] sm:$0xff] %v2276_v38  ;;  %v2408_v54 = vld [vmem:[%s1598_s22 + $0x100] sm:$0xff]  ;;  %v2419_v32 = vld [vmem:[%s1592_s30 + $0x108] sm:$0xff] }
 0x107   : > { %3927 = vst [vmem:[#allocation118_spill] sm:$0xff] %v2279_v63  ;;  %3928 = vst [vmem:[#allocation119_spill] sm:$0xff] %v2282_v18  ;;  %v2422_v29 = vld [vmem:[%s1592_s30 + $0x110] sm:$0xff]  ;;  %v2428_v30 = vld [vmem:[%s1592_s30 + $0x120] sm:$0xff] }
 0x108   : > { %3929 = vst [vmem:[#allocation120_spill] sm:$0xff] %v2285_v16  ;;  %3930 = vst [vmem:[#allocation121_spill] sm:$0xff] %v2288_v58  ;;  %v2312_v58 = vld [vmem:[%s1598_s22 + $0x90] sm:$0xff]  ;;  %v2431_v36 = vld [vmem:[%s1598_s22 + $0x108] sm:$0xff] }
 0x109   : > { %3931 = vst [vmem:[#allocation122_spill] sm:$0xff] %v2291_v51  ;;  %3932 = vst [vmem:[#allocation123_spill] sm:$0xff] %v2294_v3  ;;  %v2315_v51 = vld [vmem:[%s1598_s22 + $0x98] sm:$0xff]  ;;  %v2344_v3 = vld [vmem:[%s1598_s22 + $0xc0] sm:$0xff] }
 0x10a   : > { %3933 = vst [vmem:[#allocation124_spill] sm:$0xff] %v2297_v33  ;;  %3934 = vst [vmem:[#allocation125_spill] sm:$0xff] %v2300_v62  ;;  %v2434_v57 = vld [vmem:[%s1598_s22 + $0x110] sm:$0xff]  ;;  %v2437_v53 = vld [vmem:[%s1598_s22 + $0x118] sm:$0xff] }
 0x10b   : > { %3935 = vst [vmem:[#allocation126_spill] sm:$0xff] %v2303_v50  ;;  %3936 = vst [vmem:[#allocation127_spill] sm:$0xff] %v2306_v22  ;;  %v2440_v43 = vld [vmem:[%s1598_s22 + $0x120] sm:$0xff]  ;;  %v2453_v10 = vld [vmem:[%s1592_s30 + $0x128] sm:$0xff] }
 0x10c   : > { %3937 = vst [vmem:[#allocation128_spill] sm:$0xff] %v2309_v7  ;;  %3938 = vst [vmem:[#allocation129_spill] sm:$0xff] %v2312_v58  ;;  %v2456_v44 = vld [vmem:[%s1592_s30 + $0x130] sm:$0xff]  ;;  %v2459_v41 = vld [vmem:[%s1592_s30 + $0x138] sm:$0xff] }
 0x10d   : > { %3939 = vst [vmem:[#allocation130_spill] sm:$0xff] %v2315_v51  ;;  %3940 = vst [vmem:[#allocation131_spill] sm:$0xff] %v2318_v19  ;;  %v2462_v26 = vld [vmem:[%s1592_s30 + $0x140] sm:$0xff]  ;;  %v2465_v60 = vld [vmem:[%s1598_s22 + $0x128] sm:$0xff] }
 0x10e   : > { %3941 = vst [vmem:[#allocation132_spill] sm:$0xff] %v2323_v40  ;;  %3942 = vst [vmem:[#allocation133_spill] sm:$0xff] %v2326_v21  ;;  %v2468_v6 = vld [vmem:[%s1598_s22 + $0x130] sm:$0xff]  ;;  %v2471_v16 = vld [vmem:[%s1598_s22 + $0x138] sm:$0xff] }
 0x10f   : > { %3943 = vst [vmem:[#allocation134_spill] sm:$0xff] %v2329_v28  ;;  %3944 = vst [vmem:[#allocation135_spill] sm:$0xff] %v2332_v12  ;;  %v2490_v18 = vld [vmem:[%s1592_s30 + $0x148] sm:$0xff]  ;;  %v2493_v52 = vld [vmem:[%s1592_s30 + $0x150] sm:$0xff] }
 0x110   : > { %3945 = vst [vmem:[#allocation136_spill] sm:$0xff] %v2335_v11  ;;  %3946 = vst [vmem:[#allocation137_spill] sm:$0xff] %v2338_v5  ;;  %v2496_v63 = vld [vmem:[%s1592_s30 + $0x158] sm:$0xff]  ;;  %v2499_v25 = vld [vmem:[%s1592_s30 + $0x160] sm:$0xff] }
 0x111   : > { %3947 = vst [vmem:[#allocation138_spill] sm:$0xff] %v2341_v27  ;;  %3948 = vst [vmem:[#allocation139_spill] sm:$0xff] %v2344_v3  ;;  %v2502_v19 = vld [vmem:[%s1598_s22 + $0x140] sm:$0xff]  ;;  %v2505_v22 = vld [vmem:[%s1598_s22 + $0x148] sm:$0xff] }
 0x112   : > { %3949 = vst [vmem:[#allocation140_spill] sm:$0xff] %v2355_v37  ;;  %3950 = vst [vmem:[#allocation141_spill] sm:$0xff] %v2358_v56  ;;  %v2508_v51 = vld [vmem:[%s1598_s22 + $0x150] sm:$0xff]  ;;  %v2527_v58 = vld [vmem:[%s1592_s30 + $0x168] sm:$0xff] }
 0x113   : > { %3952 = vst [vmem:[#allocation143_spill] sm:$0xff] %v2364_v13  ;;  %3953 = vst [vmem:[#allocation144_spill] sm:$0xff] %v2367_v61  ;;  %v2530_v62 = vld [vmem:[%s1592_s30 + $0x170] sm:$0xff]  ;;  %v2533_v7 = vld [vmem:[%s1592_s30 + $0x178] sm:$0xff] }
 0x114   : > { %3954 = vst [vmem:[#allocation145_spill] sm:$0xff] %v2370_v2  ;;  %3955 = vst [vmem:[#allocation146_spill] sm:$0xff] %v2373_v8  ;;  %v2536_v50 = vld [vmem:[%s1592_s30 + $0x180] sm:$0xff]  ;;  %v2539_v3 = vld [vmem:[%s1598_s22 + $0x158] sm:$0xff] }
 0x115   : > { %3956 = vst [vmem:[#allocation147_spill] sm:$0xff] %v2376_v1  ;;  %3957 = vst [vmem:[#allocation148_spill] sm:$0xff] %v2387_v24  ;;  %v2542_v12 = vld [vmem:[%s1598_s22 + $0x160] sm:$0xff]  ;;  %v2545_v27 = vld [vmem:[%s1598_s22 + $0x168] sm:$0xff] }
 0x116   : > { %3958 = vst [vmem:[#allocation149_spill] sm:$0xff] %v2390_v23  ;;  %3959 = vst [vmem:[#allocation150_spill] sm:$0xff] %v2393_v59  ;;  %v3992_v40 = vld [vmem:[#allocation36_spill] sm:$0xff]  ;;  %v3993_v33 = vld [vmem:[#allocation37_spill] sm:$0xff] }
 0x117   : > { %3960 = vst [vmem:[#allocation151_spill] sm:$0xff] %v2396_v35  ;;  %3961 = vst [vmem:[#allocation152_spill] sm:$0xff] %v2399_v39  ;;  %v2425_v35 = vld [vmem:[%s1592_s30 + $0x118] sm:$0xff]  ;;  %vm672_vm9 = vcmp.lt.s32.totalorder %v3992_v40, %v2261_v15  ;;  %vm673_vm10 = vcmp.lt.s32.totalorder %v3993_v33, %v2261_v15  ;;  %v2564_v5 = vld [vmem:[%s1592_s30 + $0x188] sm:$0xff] }
 0x118   : > { %3962 = vst [vmem:[#allocation153_spill] sm:$0xff] %v2402_v49  ;;  %3963 = vst [vmem:[#allocation154_spill] sm:$0xff] %v2405_v45  ;;  %v3994_v9 = vld [vmem:[#allocation38_spill] sm:$0xff]  ;;  %v2567_v21 = vld [vmem:[%s1592_s30 + $0x190] sm:$0xff] }
 0x119   : > { %3964 = vst [vmem:[#allocation155_spill] sm:$0xff] %v2408_v54  ;;  %3965 = vst [vmem:[#allocation156_spill] sm:$0xff] %v2419_v32  ;;  %vm674_vm11 = vcmp.lt.s32.totalorder %v3994_v9, %v2261_v15  ;;  %v2570_v11 = vld [vmem:[%s1592_s30 + $0x198] sm:$0xff]  ;;  %v2573_v1 = vld [vmem:[%s1592_s30 + $0x1a0] sm:$0xff] }
 0x11a   : > { %3966 = vst [vmem:[#allocation157_spill] sm:$0xff] %v2422_v29  ;;  %3967 = vst [vmem:[#allocation158_spill] sm:$0xff] %v2425_v35  ;;  %v2576_v13 = vld [vmem:[%s1598_s22 + $0x170] sm:$0xff]  ;;  %v2579_v8 = vld [vmem:[%s1598_s22 + $0x178] sm:$0xff] }
 0x11b   : > { %3968 = vst [vmem:[#allocation159_spill] sm:$0xff] %v2428_v30  ;;  %3969 = vst [vmem:[#allocation160_spill] sm:$0xff] %v2431_v36  ;;  %v2582_v34 = vld [vmem:[%s1598_s22 + $0x180] sm:$0xff]  ;;  %v4002_v17 = vld [vmem:[#allocation40_spill] sm:$0xff] }
 0x11c   : > { %3970 = vst [vmem:[#allocation161_spill] sm:$0xff] %v2434_v57  ;;  %3971 = vst [vmem:[#allocation162_spill] sm:$0xff] %v2437_v53  ;;  %v2601_v56 = vld [vmem:[%s1592_s30 + $0x1a8] sm:$0xff]  ;;  %v2604_v61 = vld [vmem:[%s1592_s30 + $0x1b0] sm:$0xff] }
 0x11d   : > { %3972 = vst [vmem:[#allocation163_spill] sm:$0xff] %v2440_v43  ;;  %3973 = vst [vmem:[#allocation164_spill] sm:$0xff] %v2453_v10  ;;  %v2607_v38 = vld [vmem:[%s1592_s30 + $0x1b8] sm:$0xff]  ;;  %v2610_v54 = vld [vmem:[%s1592_s30 + $0x1c0] sm:$0xff] }
 0x11e   : > { %3974 = vst [vmem:[#allocation165_spill] sm:$0xff] %v2456_v44  ;;  %3975 = vst [vmem:[#allocation166_spill] sm:$0xff] %v2459_v41  ;;  %v2613_v37 = vld [vmem:[%s1598_s22 + $0x188] sm:$0xff]  ;;  %v2616_v45 = vld [vmem:[%s1598_s22 + $0x190] sm:$0xff] }
 0x11f   : > { %3976 = vst [vmem:[#allocation167_spill] sm:$0xff] %v2462_v26  ;;  %3977 = vst [vmem:[#allocation168_spill] sm:$0xff] %v2465_v60  ;;  %v2619_v59 = vld [vmem:[%s1598_s22 + $0x198] sm:$0xff]  ;;  %v4009_v2 = vld [vmem:[#allocation44_spill] sm:$0xff] }
 0x120   : > { %3978 = vst [vmem:[#allocation169_spill] sm:$0xff] %v2468_v6  ;;  %3979 = vst [vmem:[#allocation170_spill] sm:$0xff] %v2471_v16  ;;  %v2638_v23 = vld [vmem:[%s1592_s30 + $0x1c8] sm:$0xff]  ;;  %v2641_v39 = vld [vmem:[%s1592_s30 + $0x1d0] sm:$0xff] }
 0x121   : > { %3980 = vst [vmem:[#allocation171_spill] sm:$0xff] %v2493_v52  ;;  %3981 = vst [vmem:[#allocation172_spill] sm:$0xff] %v2496_v63  ;;  %v2644_v24 = vld [vmem:[%s1592_s30 + $0x1d8] sm:$0xff]  ;;  %v2647_v43 = vld [vmem:[%s1592_s30 + $0x1e0] sm:$0xff] }
 0x122   : > { %3982 = vst [vmem:[#allocation173_spill] sm:$0xff] %v2499_v25  ;;  %3983 = vst [vmem:[#allocation174_spill] sm:$0xff] %v2502_v19  ;;  %v2650_v30 = vld [vmem:[%s1598_s22 + $0x1a0] sm:$0xff]  ;;  %v2653_v53 = vld [vmem:[%s1598_s22 + $0x1a8] sm:$0xff] }
 0x123   : > { %3984 = vst [vmem:[#allocation175_spill] sm:$0xff] %v2505_v22  ;;  %3985 = vst [vmem:[#allocation176_spill] sm:$0xff] %v2508_v51  ;;  %v2656_v35 = vld [vmem:[%s1598_s22 + $0x1b0] sm:$0xff]  ;;  %v4017_v49 = vld [vmem:[#allocation48_spill] sm:$0xff] }
 0x124   : > { %3986 = vst [vmem:[#allocation177_spill] sm:$0xff] %v2530_v62  ;;  %3987 = vst [vmem:[#allocation178_spill] sm:$0xff] %v2533_v7  ;;  %v4018_v28 = vld [vmem:[#allocation49_spill] sm:$0xff]  ;;  %v2675_v29 = vld [vmem:[%s1592_s30 + $0x1e8] sm:$0xff] }
 0x125   : > { %3988 = vst [vmem:[#allocation179_spill] sm:$0xff] %v2536_v50  ;;  %3989 = vst [vmem:[#allocation180_spill] sm:$0xff] %v2539_v3  ;;  %v2678_v36 = vld [vmem:[%s1592_s30 + $0x1f0] sm:$0xff]  ;;  %v2681_v32 = vld [vmem:[%s1592_s30 + $0x1f8] sm:$0xff] }
 0x126   : > { %3990 = vst [vmem:[#allocation181_spill] sm:$0xff] %v2542_v12  ;;  %3991 = vst [vmem:[#allocation182_spill] sm:$0xff] %v2545_v27  ;;  %v2684_v19 = vld [vmem:[%s1598_s22 + $0x1b8] sm:$0xff]  ;;  %v2687_v26 = vld [vmem:[%s1598_s22 + $0x1c0] sm:$0xff] }
 0x127   : > { %3996 = vst [vmem:[#allocation36_spill] sm:$0xff] %v2570_v11  ;;  %3997 = vst [vmem:[#allocation37_spill] sm:$0xff] %v2573_v1  ;;  %v2690_v16 = vld [vmem:[%s1598_s22 + $0x1c8] sm:$0xff]  ;;  %v4027_v57 = vld [vmem:[#allocation53_spill] sm:$0xff] }
 0x128   : > { %3998 = vst [vmem:[#allocation183_spill] sm:$0xff] %v2576_v13  ;;  %3999 = vst [vmem:[#allocation184_spill] sm:$0xff] %v2579_v8  ;;  %v4026_v10 = vld [vmem:[#allocation52_spill] sm:$0xff]  ;;  %v4028_v9 = vld [vmem:[#allocation54_spill] sm:$0xff] }
 0x129   : > { %4000 = vst [vmem:[#allocation185_spill] sm:$0xff] %v2582_v34  ;;  %4006 = vst [vmem:[#allocation40_spill] sm:$0xff] %v2607_v38  ;;  %v4029_v6 = vld [vmem:[#allocation55_spill] sm:$0xff]  ;;  %v2709_v41 = vld [vmem:[%s1598_s22 + $0x1d0] sm:$0xff] }
 0x12a   : > { %4007 = vst [vmem:[#allocation186_spill] sm:$0xff] %v2610_v54  ;;  %4008 = vst [vmem:[#allocation187_spill] sm:$0xff] %v2619_v59  ;;  %v2712_v44 = vld [vmem:[%s1598_s22 + $0x1d8] sm:$0xff]  ;;  %v2715_v60 = vld [vmem:[%s1598_s22 + $0x1e0] sm:$0xff] }
 0x12b   : > { %4013 = vst [vmem:[#allocation44_spill] sm:$0xff] %v2641_v39  ;;  %4014 = vst [vmem:[#allocation188_spill] sm:$0xff] %v2644_v24  ;;  %v4033_v51 = vld [vmem:[#allocation56_spill] sm:$0xff]  ;;  %v4034_v52 = vld [vmem:[#allocation57_spill] sm:$0xff] }
 0x12c   : > { %4015 = vst [vmem:[#allocation189_spill] sm:$0xff] %v2647_v43  ;;  %4016 = vst [vmem:[#allocation190_spill] sm:$0xff] %v2650_v30  ;;  %v4035_v22 = vld [vmem:[#allocation58_spill] sm:$0xff]  ;;  %v4036_v12 = vld [vmem:[#allocation59_spill] sm:$0xff] }
 0x12d   : > { %4021 = vst [vmem:[#allocation48_spill] sm:$0xff] %v2675_v29  ;;  %4022 = vst [vmem:[#allocation49_spill] sm:$0xff] %v2678_v36  ;;  %v2734_v27 = vld [vmem:[%s1598_s22 + $0x1e8] sm:$0xff]  ;;  %v2737_v25 = vld [vmem:[%s1598_s22 + $0x1f0] sm:$0xff] }
 0x12e   : > { %4023 = vst [vmem:[#allocation191_spill] sm:$0xff] %v2681_v32  ;;  %4024 = vst [vmem:[#allocation192_spill] sm:$0xff] %v2684_v19  ;;  %v2740_v3 = vld [vmem:[%s1598_s22 + $0x1f8] sm:$0xff]  ;;  %v4040_v7 = vld [vmem:[#allocation60_spill] sm:$0xff] }
 0x12f   : > { %4025 = vst [vmem:[#allocation193_spill] sm:$0xff] %v2687_v26  ;;  %4030 = vst [vmem:[#allocation52_spill] sm:$0xff] %v2709_v41  ;;  %v4041_v13 = vld [vmem:[#allocation61_spill] sm:$0xff]  ;;  %v4042_v62 = vld [vmem:[#allocation62_spill] sm:$0xff] }
 0x130   : > { %4031 = vst [vmem:[#allocation53_spill] sm:$0xff] %v2712_v44  ;;  %4032 = vst [vmem:[#allocation54_spill] sm:$0xff] %v2715_v60  ;;  %v4043_v63 = vld [vmem:[#allocation63_spill] sm:$0xff]  ;;  %v4044_v1 = vld [vmem:[#allocation64_spill] sm:$0xff] }
 0x131   : > { %4037 = vst [vmem:[#allocation55_spill] sm:$0xff] %v2734_v27  ;;  %4038 = vst [vmem:[#allocation56_spill] sm:$0xff] %v2737_v25  ;;  %v4045_v59 = vld [vmem:[#allocation65_spill] sm:$0xff]  ;;  %v4046_v11 = vld [vmem:[#allocation66_spill] sm:$0xff] }
 0x132   : > { %4039 = vst [vmem:[#allocation57_spill] sm:$0xff] %v2740_v3  ;;  %v4047_v34 = vld [vmem:[#allocation67_spill] sm:$0xff]  ;;  %v4048_v54 = vld [vmem:[#allocation68_spill] sm:$0xff]  ;;  %v4049_v19 = vld [vmem:[#allocation69_spill] sm:$0xff] }
 0x133   : > { %v4050_v38 = vld [vmem:[#allocation70_spill] sm:$0xff]  ;;  %v4051_v50 = vld [vmem:[#allocation71_spill] sm:$0xff]  ;;  %v4052_v60 = vld [vmem:[#allocation76_spill] sm:$0xff] }
 0x134   : > { %v4053_v43 = vld [vmem:[#allocation77_spill] sm:$0xff]  ;;  %v4056_v41 = vld [vmem:[#allocation72_spill] sm:$0xff]  ;;  %v4058_v8 = vld [vmem:[#allocation74_spill] sm:$0xff] }
 0x135   : > { %v4054_v44 = vsub.f32 %v4052_v60, %v4053_v43  ;;  %vm708_vm15 = vcmp.lt.s32.totalorder %v4056_v41, %v2261_v15  ;;  %v4057_v39 = vld [vmem:[#allocation73_spill] sm:$0xff]  ;;  %vm710_vm13 = vcmp.lt.s32.totalorder %v4058_v8, %v2261_v15  ;;  %v4059_v30 = vld [vmem:[#allocation75_spill] sm:$0xff]  ;;  %v4065_v43 = vld [vmem:[#allocation86_spill] sm:$0xff]  ;;  %v4279_v8 = vsub.f32 %v2567_v21, %v2616_v45 }
 0x136   : > { %vm709_vm12 = vcmp.lt.s32.totalorder %v4057_v39, %v2261_v15  ;;  %vm711_vm14 = vcmp.lt.s32.totalorder %v4059_v30, %v2261_v15  ;;  %v4060_v26 = vld [vmem:[#allocation81_spill] sm:$0xff]  ;;  %v4068_v25 = vld [vmem:[#allocation83_spill] sm:$0xff]  ;;  %v4073_v20 = vld [vmem:[#allocation88_spill] sm:$0xff]  ;;  %v4278_v39 = vsub.f32 %v2564_v5, %v2613_v37  ;;  %v4286_v45 = vsub.f32 %v2601_v56, %v2653_v53 }
 0x137   : > { %v2802_v24 = vsel %vm663_vm0, %v4054_v44, 0.0  ;;  %v4061_v3 = vld [vmem:[#allocation85_spill] sm:$0xff]  ;;  %v4064_v44 = vld [vmem:[#allocation82_spill] sm:$0xff]  ;;  %v4069_v36 = vld [vmem:[#allocation87_spill] sm:$0xff] }
 0x138   : > { %4055 = vst [vmem:[#allocation58_spill] sm:$0xff] %v2802_v24  ;;  %v4062_v60 = vsub.f32 %v4060_v26, %v4061_v3  ;;  %v4066_v24 = vsub.f32 %v4064_v44, %v4065_v43  ;;  %v4070_v27 = vsub.f32 %v4068_v25, %v4069_v36  ;;  %v4072_v26 = vld [vmem:[#allocation84_spill] sm:$0xff]  ;;  %v4076_v46 = vld [vmem:[#allocation78_spill] sm:$0xff]  ;;  %v4079_v31 = vld [vmem:[#allocation89_spill] sm:$0xff] }
 0x139   : > { %vm712_vm0 = vcmp.lt.s32.totalorder %v4076_v46, %v2261_v15  ;;  %v4078_v25 = vld [vmem:[#allocation80_spill] sm:$0xff]  ;;  %v4093_v4 = vld [vmem:[#allocation99_spill] sm:$0xff]  ;;  %v4096_v55 = vld [vmem:[#allocation90_spill] sm:$0xff] }
 0x13a   : > { %v2818_v0 = vsel %vm664_vm1, %v4062_v60, 0.0  ;;  %v2826_v32 = vsel %vm665_vm2, %v4066_v24, 0.0  ;;  %v2834_v3 = vsel %vm666_vm3, %v4070_v27, 0.0  ;;  %v4074_v60 = vsub.f32 %v4072_v26, %v4073_v20  ;;  %v4077_v24 = vld [vmem:[#allocation79_spill] sm:$0xff]  ;;  %v4080_v27 = vld [vmem:[#allocation92_spill] sm:$0xff]  ;;  %v4084_v26 = vld [vmem:[#allocation93_spill] sm:$0xff] }
 0x13b   : > { %4063 = vst [vmem:[#allocation59_spill] sm:$0xff] %v2818_v0  ;;  %4067 = vst [vmem:[#allocation60_spill] sm:$0xff] %v2826_v32  ;;  %vm713_vm1 = vcmp.lt.s32.totalorder %v4077_v24, %v2261_v15  ;;  %vm714_vm2 = vcmp.lt.s32.totalorder %v4078_v25, %v2261_v15  ;;  %vm715_vm3 = vcmp.lt.s32.totalorder %v4079_v31, %v2261_v15  ;;  %v4081_v36 = vld [vmem:[#allocation96_spill] sm:$0xff]  ;;  %v4085_v20 = vld [vmem:[#allocation97_spill] sm:$0xff] }
 0x13c   : > { %4071 = vst [vmem:[#allocation61_spill] sm:$0xff] %v2834_v3  ;;  %v2842_v44 = vsel %vm667_vm4, %v4074_v60, 0.0  ;;  %v4082_v43 = vsub.f32 %v4080_v27, %v4081_v36  ;;  %v4086_v60 = vsub.f32 %v4084_v26, %v4085_v20  ;;  %v4088_v3 = vld [vmem:[#allocation94_spill] sm:$0xff]  ;;  %v4092_v36 = vld [vmem:[#allocation95_spill] sm:$0xff]  ;;  %vm716_vm4 = vcmp.lt.s32.totalorder %v4096_v55, %v2261_v15  ;;  %v4099_v48 = vld [vmem:[#allocation101_spill] sm:$0xff] }
 0x13d   : > { %4075 = vst [vmem:[#allocation62_spill] sm:$0xff] %v2842_v44  ;;  %v4089_v32 = vld [vmem:[#allocation98_spill] sm:$0xff]  ;;  %v4097_v20 = vld [vmem:[#allocation91_spill] sm:$0xff]  ;;  %v4113_v40 = vld [vmem:[#allocation109_spill] sm:$0xff]  ;;  %v3264_v24 = vsel %vm716_vm4, %v4286_v45, 0.0  ;;  %v4287_v25 = vsub.f32 %v2604_v61, %v2656_v35  ;;  %v4296_v35 = vsub.f32 %v2638_v23, %v2690_v16 }
 0x13e   : > { %v2858_v14 = vsel %vm668_vm5, %v4082_v43, 0.0  ;;  %v2866_v44 = vsel %vm669_vm6, %v4086_v60, 0.0  ;;  %v4090_v0 = vsub.f32 %v4088_v3, %v4089_v32  ;;  %v4094_v43 = vsub.f32 %v4092_v36, %v4093_v4  ;;  %v4098_v32 = vld [vmem:[#allocation100_spill] sm:$0xff]  ;;  %v4103_v60 = vld [vmem:[#allocation103_spill] sm:$0xff]  ;;  %v4118_v33 = vld [vmem:[#allocation102_spill] sm:$0xff] }
 0x13f   : > { %4083 = vst [vmem:[#allocation63_spill] sm:$0xff] %v2858_v14  ;;  %4087 = vst [vmem:[#allocation64_spill] sm:$0xff] %v2866_v44  ;;  %vm717_vm5 = vcmp.lt.s32.totalorder %v4097_v20, %v2261_v15  ;;  %v4104_v36 = vld [vmem:[#allocation107_spill] sm:$0xff]  ;;  %v4122_v14 = vld [vmem:[#allocation113_spill] sm:$0xff]  ;;  %vm4125_vm6 = vcmp.lt.s32.totalorder %v4002_v17, %v2261_v15 }
 0x140   : > { %v2874_v27 = vsel %vm670_vm7, %v4090_v0, 0.0  ;;  %v2882_v26 = vsel %vm671_vm8, %v4094_v43, 0.0  ;;  %v4100_v0 = vld [vmem:[#allocation106_spill] sm:$0xff]  ;;  %v4105_v4 = vsub.f32 %v4103_v60, %v4104_v36  ;;  %v4134_v29 = vld [vmem:[#allocation119_spill] sm:$0xff]  ;;  %v4140_v17 = vld [vmem:[#allocation120_spill] sm:$0xff] }
 0x141   : > { %4091 = vst [vmem:[#allocation65_spill] sm:$0xff] %v2874_v27  ;;  %4095 = vst [vmem:[#allocation66_spill] sm:$0xff] %v2882_v26  ;;  %v4101_v3 = vsub.f32 %v2228_v47, %v4100_v0  ;;  %v4107_v26 = vld [vmem:[#allocation104_spill] sm:$0xff]  ;;  %v4112_v0 = vld [vmem:[#allocation105_spill] sm:$0xff] }
 0x142   : > { %v2906_v43 = vsel %vm673_vm10, %v4105_v4, 0.0  ;;  %v4108_v27 = vld [vmem:[#allocation108_spill] sm:$0xff]  ;;  %v4119_v36 = vld [vmem:[#allocation110_spill] sm:$0xff]  ;;  %v4276_v41 = vld [vmem:[#allocation185_spill] sm:$0xff] }
 0x143   : > { %v2898_v42 = vsel %vm672_vm9, %v4101_v3, 0.0  ;;  %4106 = vst [vmem:[#allocation68_spill] sm:$0xff] %v2906_v43  ;;  %v4109_v44 = vsub.f32 %v4107_v26, %v4108_v27  ;;  %v4114_v3 = vsub.f32 %v4112_v0, %v4113_v40  ;;  %vm720_vm9 = vcmp.lt.s32.totalorder %v4118_v33, %v2261_v15  ;;  %v4123_v26 = vld [vmem:[#allocation117_spill] sm:$0xff]  ;;  %v4127_v0 = vld [vmem:[#allocation114_spill] sm:$0xff]  ;;  %v4133_v43 = vld [vmem:[#allocation115_spill] sm:$0xff] }
 0x144   : > { %4102 = vst [vmem:[#allocation67_spill] sm:$0xff] %v2898_v42  ;;  %v4115_v42 = vld [vmem:[#allocation39_spill] sm:$0xff]  ;;  %v4124_v4 = vsub.f32 %v4122_v14, %v4123_v26  ;;  %v4128_v40 = vld [vmem:[#allocation118_spill] sm:$0xff]  ;;  %v4135_v27 = vsub.f32 %v4133_v43, %v4134_v29  ;;  %v4139_v26 = vld [vmem:[#allocation116_spill] sm:$0xff]  ;;  %v3296_v20 = vsel %vm720_vm9, %v4296_v35, 0.0 }
 0x145   : > { %v2914_v47 = vsel %vm674_vm11, %v4109_v44, 0.0  ;;  %vm4116_vm8 = vcmp.lt.s32.totalorder %v4115_v42, %v2261_v15  ;;  %v4136_v44 = vld [vmem:[#allocation42_spill] sm:$0xff]  ;;  %v4148_v43 = vld [vmem:[#allocation124_spill] sm:$0xff]  ;;  %v4281_v30 = vld [vmem:[#allocation187_spill] sm:$0xff] }
 0x146   : > { %4111 = vst [vmem:[#allocation69_spill] sm:$0xff] %v2914_v47  ;;  %v2922_v60 = vsel %vm4116_vm8, %v4114_v3, 0.0  ;;  %v2938_v42 = vsel %vm4125_vm6, %v4124_v4, 0.0  ;;  %v4129_v3 = vsub.f32 %v4127_v0, %v4128_v40  ;;  %vm4137_vm11 = vcmp.lt.s32.totalorder %v4136_v44, %v2261_v15  ;;  %v4146_v40 = vld [vmem:[#allocation122_spill] sm:$0xff]  ;;  %v4283_v5 = vld [vmem:[#allocation37_spill] sm:$0xff]  ;;  %v4289_v31 = vld [vmem:[#allocation192_spill] sm:$0xff] }
 0x147   : > { %4117 = vst [vmem:[#allocation70_spill] sm:$0xff] %v2922_v60  ;;  %4126 = vst [vmem:[#allocation71_spill] sm:$0xff] %v2938_v42  ;;  %v4130_v60 = vld [vmem:[#allocation41_spill] sm:$0xff]  ;;  %v2954_v14 = vsel %vm4137_vm11, %v4135_v27, 0.0  ;;  %v4141_v4 = vsub.f32 %v4139_v26, %v4140_v17  ;;  %v4142_v42 = vld [vmem:[#allocation43_spill] sm:$0xff]  ;;  %vm725_vm7 = vcmp.lt.s32.totalorder %v4146_v40, %v2261_v15  ;;  %vm4151_vm11 = vcmp.lt.s32.totalorder %v4009_v2, %v2261_v15 }
 0x148   : > { %vm4131_vm8 = vcmp.lt.s32.totalorder %v4130_v60, %v2261_v15  ;;  %4138 = vst [vmem:[#allocation77_spill] sm:$0xff] %v2954_v14  ;;  %vm4143_vm6 = vcmp.lt.s32.totalorder %v4142_v42, %v2261_v15  ;;  %v4145_v60 = vld [vmem:[#allocation121_spill] sm:$0xff]  ;;  %v4149_v27 = vld [vmem:[#allocation128_spill] sm:$0xff]  ;;  %v4158_v14 = vld [vmem:[#allocation126_spill] sm:$0xff] }
 0x149   : > { %v2946_v47 = vsel %vm4131_vm8, %v4129_v3, 0.0  ;;  %v2962_v0 = vsel %vm4143_vm6, %v4141_v4, 0.0  ;;  %vm724_vm8 = vcmp.lt.s32.totalorder %v4145_v60, %v2261_v15  ;;  %v4150_v44 = vsub.f32 %v4148_v43, %v4149_v27  ;;  %v4153_v42 = vld [vmem:[#allocation125_spill] sm:$0xff]  ;;  %v4161_v29 = vld [vmem:[#allocation46_spill] sm:$0xff]  ;;  %v4163_v27 = vld [vmem:[#allocation127_spill] sm:$0xff] }
 0x14a   : > { %4132 = vst [vmem:[#allocation76_spill] sm:$0xff] %v2946_v47  ;;  %4144 = vst [vmem:[#allocation72_spill] sm:$0xff] %v2962_v0  ;;  %v4154_v26 = vld [vmem:[#allocation129_spill] sm:$0xff]  ;;  %v4159_v47 = vld [vmem:[#allocation130_spill] sm:$0xff]  ;;  %vm4162_vm10 = vcmp.lt.s32.totalorder %v4161_v29, %v2261_v15 }
 0x14b   : > { %v2976_v3 = vsel %vm4151_vm11, %v4150_v44, 0.0  ;;  %v4155_v17 = vsub.f32 %v4153_v42, %v4154_v26  ;;  %v4156_v4 = vld [vmem:[#allocation45_spill] sm:$0xff]  ;;  %v4160_v40 = vsub.f32 %v4158_v14, %v4159_v47  ;;  %v4164_v2 = vld [vmem:[#allocation131_spill] sm:$0xff]  ;;  %v4169_v26 = vld [vmem:[#allocation132_spill] sm:$0xff] }
 0x14c   : > { %4152 = vst [vmem:[#allocation73_spill] sm:$0xff] %v2976_v3  ;;  %vm4157_vm6 = vcmp.lt.s32.totalorder %v4156_v4, %v2261_v15  ;;  %v4165_v44 = vsub.f32 %v4163_v27, %v4164_v2  ;;  %v4166_v3 = vld [vmem:[#allocation47_spill] sm:$0xff]  ;;  %v4170_v4 = vld [vmem:[#allocation136_spill] sm:$0xff]  ;;  %v4174_v14 = vld [vmem:[#allocation133_spill] sm:$0xff] }
 0x14d   : > { %v2984_v0 = vsel %vm4157_vm6, %v4155_v17, 0.0  ;;  %v2992_v43 = vsel %vm4162_vm10, %v4160_v40, 0.0  ;;  %vm4167_vm11 = vcmp.lt.s32.totalorder %v4166_v3, %v2261_v15  ;;  %v4171_v17 = vsub.f32 %v4169_v26, %v4170_v4  ;;  %v4175_v29 = vld [vmem:[#allocation137_spill] sm:$0xff]  ;;  %v4178_v2 = vld [vmem:[#allocation134_spill] sm:$0xff]  ;;  %v4183_v4 = vld [vmem:[#allocation135_spill] sm:$0xff] }
 0x14e   : > { %v3000_v42 = vsel %vm4167_vm11, %v4165_v44, 0.0  ;;  %vm4172_vm6 = vcmp.lt.s32.totalorder %v4017_v49, %v2261_v15  ;;  %v4176_v40 = vsub.f32 %v4174_v14, %v4175_v29  ;;  %vm4177_vm10 = vcmp.lt.s32.totalorder %v4018_v28, %v2261_v15  ;;  %v4179_v3 = vld [vmem:[#allocation138_spill] sm:$0xff]  ;;  %v4184_v49 = vld [vmem:[#allocation139_spill] sm:$0xff]  ;;  %v4188_v29 = vld [vmem:[#allocation140_spill] sm:$0xff] }
 0x14f   : > { %4168 = vst [vmem:[#allocation74_spill] sm:$0xff] %v3000_v42  ;;  %v3008_v47 = vsel %vm4172_vm6, %v4171_v17, 0.0  ;;  %v4180_v44 = vsub.f32 %v4178_v2, %v4179_v3  ;;  %v4181_v42 = vld [vmem:[#allocation50_spill] sm:$0xff]  ;;  %v4185_v17 = vsub.f32 %v4183_v4, %v4184_v49  ;;  %v4189_v28 = vld [vmem:[#allocation144_spill] sm:$0xff]  ;;  %v4192_v3 = vld [vmem:[#allocation141_spill] sm:$0xff] }
 0x150   : > { %4173 = vst [vmem:[#allocation75_spill] sm:$0xff] %v3008_v47  ;;  %v3016_v27 = vsel %vm4177_vm10, %v4176_v40, 0.0  ;;  %vm4182_vm11 = vcmp.lt.s32.totalorder %v4181_v42, %v2261_v15  ;;  %v4186_v47 = vld [vmem:[#allocation51_spill] sm:$0xff]  ;;  %v4190_v40 = vsub.f32 %v4188_v29, %v4189_v28  ;;  %vm4191_vm10 = vcmp.lt.s32.totalorder %v4026_v10, %v2261_v15  ;;  %v4193_v42 = vld [vmem:[#allocation145_spill] sm:$0xff]  ;;  %v4196_v49 = vld [vmem:[#allocation142_spill] sm:$0xff] }
 0x151   : > { %v3024_v26 = vsel %vm4182_vm11, %v4180_v44, 0.0  ;;  %vm4187_vm6 = vcmp.lt.s32.totalorder %v4186_v47, %v2261_v15  ;;  %v4194_v44 = vsub.f32 %v4192_v3, %v4193_v42  ;;  %vm4195_vm11 = vcmp.lt.s32.totalorder %v4027_v57, %v2261_v15  ;;  %v4197_v47 = vld [vmem:[#allocation146_spill] sm:$0xff]  ;;  %v4200_v28 = vld [vmem:[#allocation143_spill] sm:$0xff]  ;;  %v4204_v42 = vld [vmem:[#allocation148_spill] sm:$0xff] }
 0x152   : > { %v3032_v14 = vsel %vm4187_vm6, %v4185_v17, 0.0  ;;  %v3040_v2 = vsel %vm4191_vm10, %v4190_v40, 0.0  ;;  %v4198_v17 = vsub.f32 %v4196_v49, %v4197_v47  ;;  %vm4199_vm6 = vcmp.lt.s32.totalorder %v4028_v9, %v2261_v15  ;;  %v4201_v10 = vld [vmem:[#allocation147_spill] sm:$0xff]  ;;  %v4205_v57 = vld [vmem:[#allocation152_spill] sm:$0xff]  ;;  %v4208_v47 = vld [vmem:[#allocation149_spill] sm:$0xff] }
 0x153   : > { %v3048_v4 = vsel %vm4195_vm11, %v4194_v44, 0.0  ;;  %v4202_v40 = vsub.f32 %v4200_v28, %v4201_v10  ;;  %vm4203_vm10 = vcmp.lt.s32.totalorder %v4029_v6, %v2261_v15  ;;  %v4206_v44 = vsub.f32 %v4204_v42, %v4205_v57  ;;  %v4209_v9 = vld [vmem:[#allocation153_spill] sm:$0xff]  ;;  %v4212_v10 = vld [vmem:[#allocation150_spill] sm:$0xff]  ;;  %v4216_v57 = vld [vmem:[#allocation151_spill] sm:$0xff] }
 0x154   : > { %v3056_v29 = vsel %vm4199_vm6, %v4198_v17, 0.0  ;;  %vm4207_vm11 = vcmp.lt.s32.totalorder %v4033_v51, %v2261_v15  ;;  %v4210_v17 = vsub.f32 %v4208_v47, %v4209_v9  ;;  %vm4211_vm6 = vcmp.lt.s32.totalorder %v4034_v52, %v2261_v15  ;;  %v4213_v6 = vld [vmem:[#allocation154_spill] sm:$0xff]  ;;  %v4217_v51 = vld [vmem:[#allocation155_spill] sm:$0xff]  ;;  %v4220_v9 = vld [vmem:[#allocation156_spill] sm:$0xff] }
 0x155   : > { %v3064_v3 = vsel %vm4203_vm10, %v4202_v40, 0.0  ;;  %v3072_v49 = vsel %vm4207_vm11, %v4206_v44, 0.0  ;;  %v4214_v40 = vsub.f32 %v4212_v10, %v4213_v6  ;;  %vm4215_vm10 = vcmp.lt.s32.totalorder %v4035_v22, %v2261_v15  ;;  %v4221_v52 = vld [vmem:[#allocation160_spill] sm:$0xff]  ;;  %v4224_v6 = vld [vmem:[#allocation157_spill] sm:$0xff]  ;;  %v4284_v46 = vld [vmem:[#allocation190_spill] sm:$0xff] }
 0x156   : > { %v3080_v28 = vsel %vm4211_vm6, %v4210_v17, 0.0  ;;  %v4218_v44 = vsub.f32 %v4216_v57, %v4217_v51  ;;  %vm4219_vm11 = vcmp.lt.s32.totalorder %v4036_v12, %v2261_v15  ;;  %v4222_v17 = vsub.f32 %v4220_v9, %v4221_v52  ;;  %v4225_v22 = vld [vmem:[#allocation161_spill] sm:$0xff]  ;;  %v4228_v51 = vld [vmem:[#allocation158_spill] sm:$0xff]  ;;  %v4232_v52 = vld [vmem:[#allocation159_spill] sm:$0xff] }
 0x157   : > { %v3088_v42 = vsel %vm4215_vm10, %v4214_v40, 0.0  ;;  %vm4223_vm6 = vcmp.lt.s32.totalorder %v4040_v7, %v2261_v15  ;;  %v4226_v40 = vsub.f32 %v4224_v6, %v4225_v22  ;;  %vm4227_vm10 = vcmp.lt.s32.totalorder %v4041_v13, %v2261_v15  ;;  %v4229_v12 = vld [vmem:[#allocation162_spill] sm:$0xff]  ;;  %v4233_v7 = vld [vmem:[#allocation163_spill] sm:$0xff]  ;;  %v4236_v22 = vld [vmem:[#allocation164_spill] sm:$0xff] }
 0x158   : > { %v3096_v47 = vsel %vm4219_vm11, %v4218_v44, 0.0  ;;  %v3104_v10 = vsel %vm4223_vm6, %v4222_v17, 0.0  ;;  %v4230_v44 = vsub.f32 %v4228_v51, %v4229_v12  ;;  %vm4231_vm11 = vcmp.lt.s32.totalorder %v4042_v62, %v2261_v15  ;;  %v4237_v13 = vld [vmem:[#allocation168_spill] sm:$0xff]  ;;  %v4240_v12 = vld [vmem:[#allocation165_spill] sm:$0xff]  ;;  %v4292_v53 = vld [vmem:[#allocation186_spill] sm:$0xff] }
 0x159   : > { %v3112_v57 = vsel %vm4227_vm10, %v4226_v40, 0.0  ;;  %v4234_v17 = vsub.f32 %v4232_v52, %v4233_v7  ;;  %vm4235_vm6 = vcmp.lt.s32.totalorder %v4043_v63, %v2261_v15  ;;  %v4238_v40 = vsub.f32 %v4236_v22, %v4237_v13  ;;  %v4241_v62 = vld [vmem:[#allocation169_spill] sm:$0xff]  ;;  %v4244_v7 = vld [vmem:[#allocation166_spill] sm:$0xff]  ;;  %v4248_v13 = vld [vmem:[#allocation167_spill] sm:$0xff] }
 0x15a   : > { %v3120_v9 = vsel %vm4231_vm11, %v4230_v44, 0.0  ;;  %vm4239_vm10 = vcmp.lt.s32.totalorder %v4044_v1, %v2261_v15  ;;  %v4242_v44 = vsub.f32 %v4240_v12, %v4241_v62  ;;  %vm4243_vm11 = vcmp.lt.s32.totalorder %v4045_v59, %v2261_v15  ;;  %v4245_v63 = vld [vmem:[#allocation170_spill] sm:$0xff]  ;;  %v4252_v59 = vld [vmem:[#allocation175_spill] sm:$0xff]  ;;  %v4293_v55 = vld [vmem:[#allocation193_spill] sm:$0xff] }
 0x15b   : > { %v3128_v6 = vsel %vm4235_vm6, %v4234_v17, 0.0  ;;  %v3136_v51 = vsel %vm4239_vm10, %v4238_v40, 0.0  ;;  %v4246_v17 = vsub.f32 %v4244_v7, %v4245_v63  ;;  %vm4247_vm6 = vcmp.lt.s32.totalorder %v4046_v11, %v2261_v15  ;;  %v4249_v1 = vld [vmem:[#allocation174_spill] sm:$0xff]  ;;  %v4255_v7 = vld [vmem:[#allocation171_spill] sm:$0xff]  ;;  %v4256_v11 = vld [vmem:[#allocation176_spill] sm:$0xff] }
 0x15c   : > { %v3144_v52 = vsel %vm4243_vm11, %v4242_v44, 0.0  ;;  %v4250_v40 = vsub.f32 %v4248_v13, %v4249_v1  ;;  %vm4251_vm10 = vcmp.lt.s32.totalorder %v4047_v34, %v2261_v15  ;;  %v4253_v62 = vsub.f32 %v2490_v18, %v4252_v59  ;;  %v4259_v13 = vld [vmem:[#allocation172_spill] sm:$0xff]  ;;  %v4306_v23 = vld [vmem:[#allocation189_spill] sm:$0xff]  ;;  %v4307_v33 = vld [vmem:[#allocation54_spill] sm:$0xff] }
 0x15d   : > { %v3152_v22 = vsel %vm4247_vm6, %v4246_v17, 0.0  ;;  %vm4254_vm11 = vcmp.lt.s32.totalorder %v4048_v54, %v2261_v15  ;;  %v4257_v63 = vsub.f32 %v4255_v7, %v4256_v11  ;;  %vm4258_vm6 = vcmp.lt.s32.totalorder %v4049_v19, %v2261_v15  ;;  %v4260_v34 = vld [vmem:[#allocation180_spill] sm:$0xff]  ;;  %v4264_v54 = vld [vmem:[#allocation181_spill] sm:$0xff]  ;;  %v4267_v19 = vld [vmem:[#allocation182_spill] sm:$0xff] }
 0x15e   : > { %v3160_v12 = vsel %vm4251_vm10, %v4250_v40, 0.0  ;;  %v3168_v44 = vsel %vm4254_vm11, %v4253_v62, 0.0  ;;  %v4261_v1 = vsub.f32 %v4259_v13, %v4260_v34  ;;  %vm4262_vm10 = vcmp.lt.s32.totalorder %v4050_v38, %v2261_v15  ;;  %v4263_v40 = vld [vmem:[#allocation173_spill] sm:$0xff]  ;;  %v4270_v38 = vld [vmem:[#allocation183_spill] sm:$0xff]  ;;  %v4311_v45 = vld [vmem:[#allocation48_spill] sm:$0xff] }
 0x15f   : > { %v3176_v17 = vsel %vm4258_vm6, %v4257_v63, 0.0  ;;  %v4265_v59 = vsub.f32 %v4263_v40, %v4264_v54  ;;  %vm4266_vm11 = vcmp.lt.s32.totalorder %v4051_v50, %v2261_v15  ;;  %v4268_v7 = vsub.f32 %v2527_v58, %v4267_v19  ;;  %v4269_v63 = vld [vmem:[#allocation177_spill] sm:$0xff]  ;;  %v4273_v50 = vld [vmem:[#allocation184_spill] sm:$0xff]  ;;  %v4275_v54 = vld [vmem:[#allocation179_spill] sm:$0xff] }
 0x160   : > { %v3184_v18 = vsel %vm4262_vm10, %v4261_v1, 0.0  ;;  %v4271_v13 = vsub.f32 %v4269_v63, %v4270_v38  ;;  %v4272_v1 = vld [vmem:[#allocation178_spill] sm:$0xff]  ;;  %v3240_v63 = vsel %vm713_vm1, %v4279_v8, 0.0  ;;  %v4280_v38 = vld [vmem:[#allocation36_spill] sm:$0xff]  ;;  %v4318_v35 = vld [vmem:[#allocation191_spill] sm:$0xff] }
 0x161   : > { %v3192_v62 = vsel %vm4266_vm11, %v4265_v59, 0.0  ;;  %v3200_v11 = vsel %vm708_vm15, %v4268_v7, 0.0  ;;  %v4274_v40 = vsub.f32 %v4272_v1, %v4273_v50  ;;  %v4277_v59 = vsub.f32 %v4275_v54, %v4276_v41 }
 0x162   : > { %v3208_v34 = vsel %vm709_vm12, %v4271_v13, 0.0  ;;  %v3232_v7 = vsel %vm712_vm0, %v4278_v39, 0.0  ;;  %v4282_v13 = vsub.f32 %v4280_v38, %v4281_v30  ;;  %v4285_v1 = vsub.f32 %v4283_v5, %v4284_v46  ;;  %v4301_v38 = vld [vmem:[#allocation188_spill] sm:$0xff] }
 0x163   : > { %v3216_v58 = vsel %vm710_vm13, %v4274_v40, 0.0  ;;  %v3224_v19 = vsel %vm711_vm14, %v4277_v59, 0.0  ;;  %v3272_v50 = vsel %vm717_vm5, %v4287_v25, 0.0  ;;  %v4288_v40 = vld [vmem:[#allocation40_spill] sm:$0xff]  ;;  %vm4291_vm12 = vcmp.lt.s32.totalorder %v4098_v32, %v2261_v15 }
 0x164   : > { %v3248_v37 = vsel %vm714_vm2, %v4282_v13, 0.0  ;;  %v3256_v21 = vsel %vm715_vm3, %v4285_v1, 0.0  ;;  %v4290_v54 = vsub.f32 %v4288_v40, %v4289_v31  ;;  %v4294_v41 = vsub.f32 %v4292_v53, %v4293_v55  ;;  %v4297_v59 = vld [vmem:[#allocation44_spill] sm:$0xff]  ;;  %v4304_v13 = vld [vmem:[#allocation111_spill] sm:$0xff]  ;;  %v4314_v31 = vld [vmem:[#allocation49_spill] sm:$0xff] }
 0x165   : > { %vm4295_vm13 = vcmp.lt.s32.totalorder %v4099_v48, %v2261_v15  ;;  %v4298_v32 = vld [vmem:[#allocation52_spill] sm:$0xff]  ;;  %vm4300_vm14 = vcmp.lt.s32.totalorder %v4119_v36, %v2261_v15  ;;  %v4302_v48 = vld [vmem:[#allocation53_spill] sm:$0xff]  ;;  %vm4305_vm15 = vcmp.lt.s32.totalorder %v4304_v13, %v2261_v15  ;;  %v4308_v5 = vsub.f32 %v4306_v23, %v4307_v33  ;;  %v4312_v36 = vld [vmem:[#allocation55_spill] sm:$0xff] }
 0x166   : > { %v3280_v56 = vsel %vm4291_vm12, %v4290_v54, 0.0  ;;  %v3288_v61 = vsel %vm4295_vm13, %v4294_v41, 0.0  ;;  %v4299_v39 = vsub.f32 %v4297_v59, %v4298_v32  ;;  %v4303_v30 = vsub.f32 %v4301_v38, %v4302_v48  ;;  %v4309_v46 = vld [vmem:[#allocation112_spill] sm:$0xff]  ;;  %v4319_v59 = vld [vmem:[#allocation57_spill] sm:$0xff]  ;;  %v4323_v48 = vld [vmem:[#allocation58_spill] sm:$0xff] }
 0x167   : > { %vm4310_vm0 = vcmp.lt.s32.totalorder %v4309_v46, %v2261_v15  ;;  %v4313_v25 = vsub.f32 %v4311_v45, %v4312_v36  ;;  %v4315_v54 = vld [vmem:[#allocation56_spill] sm:$0xff]  ;;  %v4320_v32 = vsub.f32 %v4318_v35, %v4319_v59  ;;  %v3348_v60 = vmul.f32 %v4323_v48, %v4323_v48  ;;  %v4327_v45 = vld [vmem:[#allocation62_spill] sm:$0xff]  ;;  %v4328_v36 = vld [vmem:[#allocation63_spill] sm:$0xff] }
 0x168   : > { %v3304_v8 = vsel %vm4300_vm14, %v4299_v39, 0.0  ;;  %v3312_v16 = vsel %vm4305_vm15, %v4303_v30, 0.0  ;;  %v3320_v1 = vsel %vm4310_vm0, %v4308_v5, 0.0  ;;  %v4316_v53 = vsub.f32 %v4314_v31, %v4315_v54  ;;  %v4321_v39 = vld [vmem:[#allocation123_spill] sm:$0xff]  ;;  %v4325_v23 = vld [vmem:[#allocation60_spill] sm:$0xff]  ;;  %v4326_v5 = vld [vmem:[#allocation61_spill] sm:$0xff] }
 0x169   : > { %v3328_v40 = vsel %vm724_vm8, %v4313_v25, 0.0  ;;  %vm4322_vm1 = vcmp.lt.s32.totalorder %v4321_v39, %v2261_v15  ;;  %v4324_v30 = vld [vmem:[#allocation59_spill] sm:$0xff]  ;;  %v3356_v33 = vmul.f32 %v4325_v23, %v4325_v23  ;;  %v3360_v46 = vmul.f32 %v4326_v5, %v4326_v5  ;;  %v4329_v31 = vld [vmem:[#allocation64_spill] sm:$0xff]  ;;  %v4331_v35 = vld [vmem:[#allocation66_spill] sm:$0xff] }
 0x16a   : > { %v3336_v41 = vsel %vm725_vm7, %v4316_v53, 0.0  ;;  %v3344_v38 = vsel %vm4322_vm1, %v4320_v32, 0.0  ;;  %v3352_v13 = vmul.f32 %v4324_v30, %v4324_v30  ;;  %v3364_v15 = vmul.f32 %v4327_v45, %v4327_v45  ;;  %v4330_v53 = vld [vmem:[#allocation65_spill] sm:$0xff]  ;;  %v4332_v32 = vld [vmem:[#allocation67_spill] sm:$0xff]  ;;  %v4334_v48 = vld [vmem:[#allocation68_spill] sm:$0xff] }
 0x16b   : > { %v3368_v25 = vmul.f32 %v4328_v36, %v4328_v36  ;;  %v3372_v54 = vmul.f32 %v4329_v31, %v4329_v31  ;;  %v3376_v55 = vmul.f32 %v4330_v53, %v4330_v53  ;;  %v3380_v59 = vmul.f32 %v4331_v35, %v4331_v35  ;;  %v4336_v23 = vld [vmem:[#allocation69_spill] sm:$0xff]  ;;  %v4338_v45 = vld [vmem:[#allocation70_spill] sm:$0xff]  ;;  %v4339_v31 = vld [vmem:[#allocation71_spill] sm:$0xff] }
 0x16c   : > { %v3384_v39 = vmul.f32 %v4332_v32, %v4332_v32  ;;  %v3388_v30 = vmul.f32 %v4334_v48, %v4334_v48  ;;  %v3392_v5 = vmul.f32 %v4336_v23, %v4336_v23  ;;  %v3396_v36 = vmul.f32 %v4338_v45, %v4338_v45  ;;  %v4340_v35 = vld [vmem:[#allocation76_spill] sm:$0xff] }
 0x16d   : > { %v3400_v53 = vmul.f32 %v4339_v31, %v4339_v31  ;;  %v3404_v32 = vmul.f32 %v4340_v35, %v4340_v35  ;;  %v3420_v31 = vmul.f32 %v2984_v0, %v2984_v0  ;;  %v3424_v35 = vmul.f32 %v2992_v43, %v2992_v43 }
 0x16e   : > { %4333 = vst [vmem:[#allocation81_spill] sm:$0xff] %v3384_v39  ;;  %4335 = vst [vmem:[#allocation85_spill] sm:$0xff] %v3388_v30  ;;  %v4342_v39 = vld [vmem:[#allocation77_spill] sm:$0xff]  ;;  %v4344_v30 = vld [vmem:[#allocation72_spill] sm:$0xff]  ;;  %v3440_v0 = vmul.f32 %v3024_v26, %v3024_v26  ;;  %v3444_v43 = vmul.f32 %v3032_v14, %v3032_v14  ;;  %v3460_v26 = vmul.f32 %v3064_v3, %v3064_v3 }
 0x16f   : > { %4337 = vst [vmem:[#allocation82_spill] sm:$0xff] %v3392_v5  ;;  %4341 = vst [vmem:[#allocation86_spill] sm:$0xff] %v3404_v32  ;;  %v3408_v48 = vmul.f32 %v4342_v39, %v4342_v39  ;;  %v3412_v23 = vmul.f32 %v4344_v30, %v4344_v30  ;;  %v4345_v5 = vld [vmem:[#allocation73_spill] sm:$0xff]  ;;  %v4346_v32 = vld [vmem:[#allocation74_spill] sm:$0xff]  ;;  %v3464_v14 = vmul.f32 %v3072_v49, %v3072_v49 }
 0x170   : > { %v3416_v45 = vmul.f32 %v4345_v5, %v4345_v5  ;;  %v3428_v39 = vmul.f32 %v4346_v32, %v4346_v32  ;;  %v3436_v5 = vmul.f32 %v3016_v27, %v3016_v27  ;;  %v3448_v32 = vmul.f32 %v3040_v2, %v3040_v2  ;;  %4351 = vst [vmem:[#allocation78_spill] sm:$0xff] %v3460_v26 }
 0x171   : > { %4343 = vst [vmem:[#allocation83_spill] sm:$0xff] %v3408_v48  ;;  %v4347_v48 = vld [vmem:[#allocation75_spill] sm:$0xff]  ;;  %v3456_v27 = vmul.f32 %v3056_v29, %v3056_v29  ;;  %4352 = vst [vmem:[#allocation79_spill] sm:$0xff] %v3464_v14  ;;  %v3468_v2 = vmul.f32 %v3080_v28, %v3080_v28  ;;  %v1015_v29 = vmul.f32 %v3096_v47, %v3096_v47 }
 0x172   : > { %v3432_v30 = vmul.f32 %v4347_v48, %v4347_v48  ;;  %4348 = vst [vmem:[#allocation87_spill] sm:$0xff] %v3448_v32  ;;  %v3452_v48 = vmul.f32 %v3048_v4, %v3048_v4  ;;  %v3472_v4 = vmul.f32 %v3088_v42, %v3088_v42  ;;  %v1017_v3 = vmul.f32 %v3112_v57, %v3112_v57 }
 0x173   : > { %4350 = vst [vmem:[#allocation88_spill] sm:$0xff] %v3456_v27  ;;  %4353 = vst [vmem:[#allocation80_spill] sm:$0xff] %v3468_v2  ;;  %v1016_v27 = vmul.f32 %v3104_v10, %v3104_v10  ;;  %v1018_v49 = vmul.f32 %v3120_v9, %v3120_v9  ;;  %v1019_v28 = vmul.f32 %v3128_v6, %v3128_v6 }
 0x174   : > { %4349 = vst [vmem:[#allocation84_spill] sm:$0xff] %v3452_v48  ;;  %4354 = vst [vmem:[#allocation89_spill] sm:$0xff] %v3472_v4  ;;  %v1020_v2 = vmul.f32 %v3136_v51, %v3136_v51  ;;  %v1021_v42 = vmul.f32 %v3144_v52, %v3144_v52  ;;  %v1022_v47 = vmul.f32 %v3152_v22, %v3152_v22 }
 0x175   : > { %v1023_v10 = vmul.f32 %v3160_v12, %v3160_v12  ;;  %v1024_v57 = vmul.f32 %v3168_v44, %v3168_v44  ;;  %v1025_v9 = vmul.f32 %v3176_v17, %v3176_v17  ;;  %v1026_v6 = vmul.f32 %v3184_v18, %v3184_v18  ;;  %v4355_v48 = vld [vmem:[#allocation81_spill] sm:$0xff] }
 0x176   : > { %v1027_v51 = vmul.f32 %v3192_v62, %v3192_v62  ;;  %v1028_v52 = vmul.f32 %v3200_v11, %v3200_v11  ;;  %v1029_v22 = vmul.f32 %v3208_v34, %v3208_v34  ;;  %v1030_v12 = vmul.f32 %v3216_v58, %v3216_v58  ;;  %v4356_v32 = vld [vmem:[#allocation85_spill] sm:$0xff] }
 0x177   : > { %v1031_v44 = vmul.f32 %v3224_v19, %v3224_v19  ;;  %v1032_v17 = vmul.f32 %v3232_v7, %v3232_v7  ;;  %v1033_v18 = vmul.f32 %v3240_v63, %v3240_v63  ;;  %v1034_v62 = vmul.f32 %v3248_v37, %v3248_v37 }
 0x178   : > { %v1035_v11 = vmul.f32 %v3256_v21, %v3256_v21  ;;  %v1036_v34 = vmul.f32 %v3264_v24, %v3264_v24  ;;  %v1037_v58 = vmul.f32 %v3272_v50, %v3272_v50  ;;  %v1038_v19 = vmul.f32 %v3280_v56, %v3280_v56 }
 0x179   : > { %v1039_v7 = vmul.f32 %v3288_v61, %v3288_v61  ;;  %v1040_v63 = vmul.f32 %v3296_v20, %v3296_v20  ;;  %v1041_v37 = vmul.f32 %v3304_v8, %v3304_v8  ;;  %v1042_v21 = vmul.f32 %v3312_v16, %v3312_v16 }
 0x17a   : > { %v1043_v24 = vmul.f32 %v3320_v1, %v3320_v1  ;;  %v1044_v50 = vmul.f32 %v3328_v40, %v3328_v40  ;;  %v1045_v56 = vmul.f32 %v3336_v41, %v3336_v41  ;;  %v1046_v61 = vmul.f32 %v3344_v38, %v3344_v38 }
 0x17b   : > { %v1047_v20 = vadd.f32 %v1015_v29, %v3348_v60  ;;  %v1048_v4 = vadd.f32 %v1016_v27, %v3352_v13  ;;  %v1049_v8 = vadd.f32 %v1017_v3, %v3356_v33  ;;  %v1050_v16 = vadd.f32 %v1018_v49, %v3360_v46  ;;  %v4357_v29 = vld [vmem:[#allocation82_spill] sm:$0xff]  ;;  %v4359_v3 = vld [vmem:[#allocation83_spill] sm:$0xff] }
 0x17c   : > { %v1051_v14 = vadd.f32 %v1019_v28, %v3364_v15  ;;  %v1052_v1 = vadd.f32 %v1020_v2, %v3368_v25  ;;  %v1053_v40 = vadd.f32 %v1021_v42, %v3372_v54  ;;  %v1054_v26 = vadd.f32 %v1022_v47, %v3376_v55  ;;  %v4358_v27 = vld [vmem:[#allocation86_spill] sm:$0xff]  ;;  %v4360_v28 = vld [vmem:[#allocation87_spill] sm:$0xff]  ;;  %v4361_v47 = vld [vmem:[#allocation84_spill] sm:$0xff] }
 0x17d   : > { %v1055_v41 = vadd.f32 %v1023_v10, %v3380_v59  ;;  %v1056_v38 = vadd.f32 %v1024_v57, %v4355_v48  ;;  %v1057_v60 = vadd.f32 %v1025_v9, %v4356_v32  ;;  %v1058_v13 = vadd.f32 %v1026_v6, %v4357_v29  ;;  %v4362_v10 = vld [vmem:[#allocation88_spill] sm:$0xff]  ;;  %v4363_v57 = vld [vmem:[#allocation78_spill] sm:$0xff]  ;;  %v4364_v9 = vld [vmem:[#allocation79_spill] sm:$0xff] }
 0x17e   : > { %v1059_v33 = vadd.f32 %v1027_v51, %v3396_v36  ;;  %v1060_v46 = vadd.f32 %v1028_v52, %v3400_v53  ;;  %v1061_v15 = vadd.f32 %v1029_v22, %v4358_v27  ;;  %v1062_v25 = vadd.f32 %v1030_v12, %v4359_v3  ;;  %v4365_v6 = vld [vmem:[#allocation80_spill] sm:$0xff]  ;;  %v4366_v51 = vld [vmem:[#allocation89_spill] sm:$0xff] }
 0x17f   : > { %v1063_v54 = vadd.f32 %v1031_v44, %v3412_v23  ;;  %v1064_v55 = vadd.f32 %v1032_v17, %v3416_v45  ;;  %v1065_v59 = vadd.f32 %v1033_v18, %v3420_v31  ;;  %v1066_v48 = vadd.f32 %v1034_v62, %v3424_v35 }
 0x180   : > { %v1067_v32 = vadd.f32 %v1035_v11, %v3428_v39  ;;  %v1068_v2 = vadd.f32 %v1036_v34, %v3432_v30  ;;  %v1069_v36 = vadd.f32 %v1037_v58, %v3436_v5  ;;  %v1070_v53 = vadd.f32 %v1038_v19, %v3440_v0 }
 0x181   : > { %v1071_v49 = vadd.f32 %v1039_v7, %v3444_v43  ;;  %v1072_v42 = vadd.f32 %v1040_v63, %v4360_v28  ;;  %v1073_v23 = vadd.f32 %v1041_v37, %v4361_v47  ;;  %v1074_v45 = vadd.f32 %v1042_v21, %v4362_v10 }
 0x182   : > { %v1075_v31 = vadd.f32 %v1043_v24, %v4363_v57  ;;  %v1076_v35 = vadd.f32 %v1044_v50, %v4364_v9  ;;  %v1077_v39 = vadd.f32 %v1045_v56, %v4365_v6  ;;  %v1078_v30 = vadd.f32 %v1046_v61, %v4366_v51 }
 0x183   : > { %v1079_v52 = vadd.f32 %v1063_v54, %v1047_v20  ;;  %v1080_v5 = vadd.f32 %v1064_v55, %v1048_v4  ;;  %v1081_v22 = vadd.f32 %v1065_v59, %v1049_v8  ;;  %v1082_v0 = vadd.f32 %v1066_v48, %v1050_v16 }
 0x184   : > { %v1083_v12 = vadd.f32 %v1067_v32, %v1051_v14  ;;  %v1084_v43 = vadd.f32 %v1068_v2, %v1052_v1  ;;  %v1085_v44 = vadd.f32 %v1069_v36, %v1053_v40  ;;  %v1086_v17 = vadd.f32 %v1070_v53, %v1054_v26 }
 0x185   : > { %v1087_v18 = vadd.f32 %v1071_v49, %v1055_v41  ;;  %v1088_v62 = vadd.f32 %v1072_v42, %v1056_v38  ;;  %v1089_v11 = vadd.f32 %v1073_v23, %v1057_v60  ;;  %v1090_v34 = vadd.f32 %v1074_v45, %v1058_v13  ;;  %v1110_v41 = vld [vmem:[#allocation7] sm:$0xff] }
 0x186   : > { %v1091_v58 = vadd.f32 %v1075_v31, %v1059_v33  ;;  %v1092_v19 = vadd.f32 %v1076_v35, %v1060_v46  ;;  %v1093_v7 = vadd.f32 %v1077_v39, %v1061_v15  ;;  %v1094_v63 = vadd.f32 %v1078_v30, %v1062_v25 }
 0x187   : > { %v1095_v37 = vadd.f32 %v1087_v18, %v1079_v52  ;;  %v1096_v21 = vadd.f32 %v1088_v62, %v1080_v5  ;;  %v1097_v24 = vadd.f32 %v1089_v11, %v1081_v22  ;;  %v1098_v50 = vadd.f32 %v1090_v34, %v1082_v0 }
 0x188   : > { %v1099_v56 = vadd.f32 %v1091_v58, %v1083_v12  ;;  %v1100_v4 = vadd.f32 %v1092_v19, %v1084_v43  ;;  %v1101_v61 = vadd.f32 %v1093_v7, %v1085_v44  ;;  %v1102_v20 = vadd.f32 %v1094_v63, %v1086_v17 }
 0x18a   : > { %v1103_v14 = vadd.f32 %v1099_v56, %v1095_v37  ;;  %v1104_v8 = vadd.f32 %v1100_v4, %v1096_v21  ;;  %v1105_v16 = vadd.f32 %v1101_v61, %v1097_v24  ;;  %v1106_v26 = vadd.f32 %v1102_v20, %v1098_v50 }
 0x18c   : > { %v1107_v1 = vadd.f32 %v1105_v16, %v1103_v14  ;;  %v1108_v40 = vadd.f32 %v1106_v26, %v1104_v8 }
 0x18e   : > { %v1109_v38 = vadd.f32 %v1108_v40, %v1107_v1 }
 0x190   : > { %v1111_v60 = vadd.f32 %v1110_v41, %v1109_v38 }
 0x192   : > { %1112 = vst [vmem:[#allocation7] sm:$0xff] %v1111_v60 }
 0x193 PF: > { %p3572_p0 = scmp.eq.s32.totalorder %s1206_s16, 3  ;;  %s1439_s24 = smov [#allocation7]  }
 0x194   : > { %s1122_s25 = sshll.u32 %s1439_s24, 4  ;;  %s1123_s25 = int_to_ptr.vmem [resolvable:$true] %s1122_s25 }
 0x195   : > { %s1350_s26 = scalar_lea.vmem %s1123_s25, 128  ;;  %p1357_p8 = scmp.lt.s32.totalorder %s1123_s25, %s1123_s25 }
 0x196   : > { %p1351_p2 = scmp.ne.s32.totalorder %s1123_s25, %s1350_s26  ;;  %p1358_p12 = scmp.lt.s32.totalorder %s1350_s26, %s1350_s26 }
 0x198   : > { %p1352_p1 = pnand %p1351_p2, %p3572_p0  ;;  %p1359_p5 = por %p1358_p12, %p1357_p8 }
 0x19a   : > { %p1353_p3 = pneg %p1352_p1 }
 0x19c   : > { %p1360_p4 = pnand %p1359_p5, %p1353_p3 }
 0x19e   : > { %1363 = shalt.err (!%p1360_p4)
}
 0x19f   : > { %s1364_s16 = scalar_lea.hbm %s3618_s2, 128 }
 0x1a0   : > { %p1365_p6 = scmp.ne.s32.totalorder %s3618_s2, %s1364_s16  ;;  %p1370_p7 = scmp.lt.u32.totalorder %s1364_s16, %s3618_s2 }
 0x1a2   : > { %p1366_p9 = pnand %p1365_p6, %p3572_p0 }
 0x1a4   : > { %p1367_p10 = pneg %p1366_p9 }
 0x1a6   : > { %p1372_p11 = pnand %p1370_p7, %p1367_p10 }
 0x1a8   : > { %1375 = shalt.err (!%p1372_p11)
}
 0x1a9   : > { %1239 = dma.vmem_to_hbm [thread:$0]  (%p3572_p0), %s1123_s25, 128, %s3618_s2, [#allocation4]  }
 0x1aa   : > { %1409 = dma.done.wait (%p3572_p0), [#allocation4], 128  }
 0x1ab   : > { %1411 = vsyncadd (%p3572_p0), [#allocation4], 4294967168 }
 0x1ac PF: > { %s19_s14 = sadd.s32 1, %s1434_s14   ;;  %s4368_s9 = smov %s1418_s10 }
 0x1ad   : > { %p16_p13 = scmp.ge.s32.totalorder %s19_s14, 6   ;;  %s4369_s10 = smov %s1422_s11 }
 0x1ae   : > { %s4370_s11 = smov %s1510_s23  ;;  %s4371_s12 = smov %s1430_s13 }
 0x1af   : > { %s4372_s13 = smov %s4374_s15  ;;  %18 = sbr.rel (!%p16_p13) target bundleno = 7 (0x7), region = 91 }
 0x1b6   :  { %1135 = vsyncpa [#allocation3], 1 }
 0x1b7   :  { %1137 = vsyncpa [#allocation3 + $0x1], 1 }
 0x1b8   :  { %1138 = vsyncpa [#allocation6], 1 }
 0x1b9   :  { %1140 = vsyncpa [#allocation6 + $0x1], 1 }
 0x1ba   :  { %1141 = vsyncpa [#allocation4], 1 }
 0x1bb   :  { %1143 = vsyncpa [#allocation4 + $0x1], 1 }

</bundles_post_ra>
